<compile_context>
chip_gen: v7x
topology: tpu7x:2x2x1
jax: 0.10.0
libtpu: 0.0.40
codegen_flags: <defaults>
</compile_context>

<pallas_src>
import jax
import jax.numpy as jnp
from jax.experimental import pallas as pl
from jax.experimental.pallas import tpu as pltpu


def _lstm_decoder_feedback_kernel(x_ref, wl_ref, bl_ref, wp1_ref, bp1_ref,
                                  wp2_ref, bp2_ref, wihx_ref, wihp_ref, bg_ref,
                                  whh_ref, w1_ref, b1_ref, w2_ref, b2_ref,
                                  out_ref):
    f32 = jnp.float32
    B = x_ref.shape[0]
    H = whh_ref.shape[0]            # hidden = 2 * dim_z
    dim = wp2_ref.shape[1]
    T = out_ref.shape[1] // dim     # input_len

    # --- prologue (outside the recurrence) -------------------------------
    x = jnp.maximum(
        jnp.dot(x_ref[...], wl_ref[...], preferred_element_type=f32)
        + bl_ref[...], 0.0)
    p = jnp.maximum(
        jnp.dot(x, wp1_ref[...], preferred_element_type=f32)
        + bp1_ref[...], 0.0)
    pose = jnp.dot(p, wp2_ref[...], preferred_element_type=f32) + bp2_ref[...]

    # Loop-invariant gate contribution from x (plus b_ih + b_hh).
    gx = jnp.dot(x, wihx_ref[...], preferred_element_type=f32) + bg_ref[...]

    # Hoist weight loads out of the loop.
    wihp = wihp_ref[...]
    whh = whh_ref[...]
    w1, b1 = w1_ref[...], b1_ref[...]
    w2, b2 = w2_ref[...], b2_ref[...]

    h = jnp.zeros((B, H), f32)
    c = jnp.zeros((B, H), f32)

    # --- fully unrolled recurrence (T is small & static) ------------------
    poses = []
    for _ in range(T):
        gates = (gx
                 + jnp.dot(pose, wihp, preferred_element_type=f32)
                 + jnp.dot(h, whh, preferred_element_type=f32))
        sig = jax.nn.sigmoid(gates)                 # one EUP push: i, f, o
        g_g = jnp.tanh(gates[:, 2 * H:3 * H])       # one EUP push: g
        c = sig[:, H:2 * H] * c + sig[:, 0:H] * g_g
        h = sig[:, 3 * H:4 * H] * jnp.tanh(c)
        y = jnp.maximum(
            jnp.dot(h, w1, preferred_element_type=f32) + b1, 0.0)
        pose = jnp.dot(y, w2, preferred_element_type=f32) + b2
        poses.append(pose)

    # Single lane-dense bulk store, already batch-first: (B, T*dim).
    out_ref[...] = jnp.concatenate(poses, axis=-1).astype(out_ref.dtype)


def lstm_decoder_feedback_forward(x, params, input_len):
    B = x.shape[0]
    dim = params["w2"].shape[1]

    vmem_spec = pl.BlockSpec(memory_space=pltpu.MemorySpace.VMEM)
    out = pl.pallas_call(
        _lstm_decoder_feedback_kernel,
        out_shape=jax.ShapeDtypeStruct((B, input_len * dim), jnp.float32),
        in_specs=[vmem_spec] * 15,
        out_specs=vmem_spec,
    )(x,
      params["wl"], params["bl"],
      params["wp1"], params["bp1"],
      params["wp2"], params["bp2"],
      params["wihx"], params["wihp"], params["bg"],
      params["whh"],
      params["w1"], params["b1"],
      params["w2"], params["b2"])

    # Contiguous reshape only (no transpose): (B, T*dim) -> (B, T, dim).
    return out.reshape(B, input_len, dim)


def reference_forward(x, params, input_len):
    """Pure-JAX reference mirroring the PyTorch module (residual=False)."""
    H = params["whh"].shape[0]
    relu = jax.nn.relu
    B = x.shape[0]
    x = relu(x @ params["wl"] + params["bl"][0])
    p = relu(x @ params["wp1"] + params["bp1"][0])
    pose = p @ params["wp2"] + params["bp2"][0]
    gx = x @ params["wihx"] + params["bg"][0]
    h = jnp.zeros((B, H), jnp.float32)
    c = jnp.zeros((B, H), jnp.float32)
    outs = []
    for _ in range(input_len):
        gates = gx + pose @ params["wihp"] + h @ params["whh"]
        i_g = jax.nn.sigmoid(gates[:, 0:H])
        f_g = jax.nn.sigmoid(gates[:, H:2 * H])
        g_g = jnp.tanh(gates[:, 2 * H:3 * H])
        o_g = jax.nn.sigmoid(gates[:, 3 * H:4 * H])
        c = f_g * c + i_g * g_g
        h = o_g * jnp.tanh(c)
        y = relu(h @ params["w1"] + params["b1"][0])
        pose = y @ params["w2"] + params["b2"][0]
        outs.append(pose)
    return jnp.stack(outs, axis=1)


if __name__ == "__main__":
    # Small shapes consistent with the module's forward.
    B, input_len, dim, dim_z = 2, 8, 16, 32
    H = 2 * dim_z                        # LSTMCell hidden size
    IN = dim_z + dim                     # LSTMCell input size (cat of x, pose)

    key = jax.random.PRNGKey(0)
    keys = jax.random.split(key, 15)
    s = 0.1
    params = {
        # self.linear
        "wl":   s * jax.random.normal(keys[0], (dim_z, dim_z), jnp.float32),
        "bl":   s * jax.random.normal(keys[1], (1, dim_z), jnp.float32),
        # self.pose_linear1 / pose_linear2
        "wp1":  s * jax.random.normal(keys[2], (dim_z, dim_z), jnp.float32),
        "bp1":  s * jax.random.normal(keys[3], (1, dim_z), jnp.float32),
        "wp2":  s * jax.random.normal(keys[4], (dim_z, dim), jnp.float32),
        "bp2":  s * jax.random.normal(keys[5], (1, dim), jnp.float32),
        # self.rnn_cell: W_ih^T split into x-part and pose-part; bg = b_ih + b_hh
        "wihx": s * jax.random.normal(keys[6], (dim_z, 4 * H), jnp.float32),
        "wihp": s * jax.random.normal(keys[7], (dim, 4 * H), jnp.float32),
        "bg":   s * jax.random.normal(keys[8], (1, 4 * H), jnp.float32),
        "whh":  s * jax.random.normal(keys[9], (H, 4 * H), jnp.float32),
        # self.linear1 / linear2
        "w1":   s * jax.random.normal(keys[10], (H, dim_z), jnp.float32),
        "b1":   s * jax.random.normal(keys[11], (1, dim_z), jnp.float32),
        "w2":   s * jax.random.normal(keys[12], (dim_z, dim), jnp.float32),
        "b2":   s * jax.random.normal(keys[13], (1, dim), jnp.float32),
    }
    x = jax.random.normal(keys[14], (B, dim_z), jnp.float32)

    out = lstm_decoder_feedback_forward(x, params, input_len)
    out = jax.block_until_ready(out)

    ref = reference_forward(x, params, input_len)
    assert out.shape == (B, input_len, dim), out.shape
    err = float(jnp.max(jnp.abs(out - ref)))
    assert jnp.allclose(out, ref, atol=1e-4, rtol=1e-4), f"max abs err {err}"
    print("KERNEL_OK")
</pallas_src>

<mosaic_0001>
module attributes {stable_mosaic.version = 11 : i64} {
  func.func @_lstm_decoder_feedback_kernel(%arg0: memref<2x32xf32, #tpu.memory_space<vmem>>, %arg1: memref<32x32xf32, #tpu.memory_space<vmem>>, %arg2: memref<1x32xf32, #tpu.memory_space<vmem>>, %arg3: memref<32x32xf32, #tpu.memory_space<vmem>>, %arg4: memref<1x32xf32, #tpu.memory_space<vmem>>, %arg5: memref<32x16xf32, #tpu.memory_space<vmem>>, %arg6: memref<1x16xf32, #tpu.memory_space<vmem>>, %arg7: memref<32x256xf32, #tpu.memory_space<vmem>>, %arg8: memref<16x256xf32, #tpu.memory_space<vmem>>, %arg9: memref<1x256xf32, #tpu.memory_space<vmem>>, %arg10: memref<64x256xf32, #tpu.memory_space<vmem>>, %arg11: memref<64x32xf32, #tpu.memory_space<vmem>>, %arg12: memref<1x32xf32, #tpu.memory_space<vmem>>, %arg13: memref<32x16xf32, #tpu.memory_space<vmem>>, %arg14: memref<1x16xf32, #tpu.memory_space<vmem>>, %arg15: memref<2x128xf32, #tpu.memory_space<vmem>>) attributes {dimension_semantics = [], scalar_prefetch = 0 : i64, scratch_operands = 0 : i64, tpu.core_type = #tpu.core_type<tc>} {
    %c0 = arith.constant 0 : index
    %c0_0 = arith.constant 0 : index
    %0 = vector.load %arg0[%c0, %c0_0] : memref<2x32xf32, #tpu.memory_space<vmem>>, vector<2x32xf32>
    %c0_1 = arith.constant 0 : index
    %c0_2 = arith.constant 0 : index
    %1 = vector.load %arg1[%c0_1, %c0_2] : memref<32x32xf32, #tpu.memory_space<vmem>>, vector<32x32xf32>
    %cst = arith.constant dense<0.000000e+00> : vector<2x32xf32>
    %2 = tpu.matmul %0, %1, %cst {dimension_numbers = #tpu.dot_dimension_numbers<[1], [0], [0], [1], [0, 0, 1, 1], [], []>} : vector<2x32xf32>, vector<32x32xf32>, vector<2x32xf32> -> vector<2x32xf32>
    %c0_3 = arith.constant 0 : index
    %c0_4 = arith.constant 0 : index
    %3 = vector.load %arg2[%c0_3, %c0_4] : memref<1x32xf32, #tpu.memory_space<vmem>>, vector<1x32xf32>
    %4 = vector.broadcast %3 : vector<1x32xf32> to vector<2x32xf32>
    %5 = arith.addf %2, %4 : vector<2x32xf32>
    %cst_5 = arith.constant 0.000000e+00 : f32
    %6 = vector.broadcast %cst_5 : f32 to vector<2x32xf32>
    %7 = arith.maximumf %5, %6 : vector<2x32xf32>
    %c0_6 = arith.constant 0 : index
    %c0_7 = arith.constant 0 : index
    %8 = vector.load %arg3[%c0_6, %c0_7] : memref<32x32xf32, #tpu.memory_space<vmem>>, vector<32x32xf32>
    %cst_8 = arith.constant dense<0.000000e+00> : vector<2x32xf32>
    %9 = tpu.matmul %7, %8, %cst_8 {dimension_numbers = #tpu.dot_dimension_numbers<[1], [0], [0], [1], [0, 0, 1, 1], [], []>} : vector<2x32xf32>, vector<32x32xf32>, vector<2x32xf32> -> vector<2x32xf32>
    %c0_9 = arith.constant 0 : index
    %c0_10 = arith.constant 0 : index
    %10 = vector.load %arg4[%c0_9, %c0_10] : memref<1x32xf32, #tpu.memory_space<vmem>>, vector<1x32xf32>
    %11 = vector.broadcast %10 : vector<1x32xf32> to vector<2x32xf32>
    %12 = arith.addf %9, %11 : vector<2x32xf32>
    %cst_11 = arith.constant 0.000000e+00 : f32
    %13 = vector.broadcast %cst_11 : f32 to vector<2x32xf32>
    %14 = arith.maximumf %12, %13 : vector<2x32xf32>
    %c0_12 = arith.constant 0 : index
    %c0_13 = arith.constant 0 : index
    %15 = vector.load %arg5[%c0_12, %c0_13] : memref<32x16xf32, #tpu.memory_space<vmem>>, vector<32x16xf32>
    %cst_14 = arith.constant dense<0.000000e+00> : vector<2x16xf32>
    %16 = tpu.matmul %14, %15, %cst_14 {dimension_numbers = #tpu.dot_dimension_numbers<[1], [0], [0], [1], [0, 0, 1, 1], [], []>} : vector<2x32xf32>, vector<32x16xf32>, vector<2x16xf32> -> vector<2x16xf32>
    %c0_15 = arith.constant 0 : index
    %c0_16 = arith.constant 0 : index
    %17 = vector.load %arg6[%c0_15, %c0_16] : memref<1x16xf32, #tpu.memory_space<vmem>>, vector<1x16xf32>
    %18 = vector.broadcast %17 : vector<1x16xf32> to vector<2x16xf32>
    %19 = arith.addf %16, %18 : vector<2x16xf32>
    %c0_17 = arith.constant 0 : index
    %c0_18 = arith.constant 0 : index
    %20 = vector.load %arg7[%c0_17, %c0_18] : memref<32x256xf32, #tpu.memory_space<vmem>>, vector<32x256xf32>
    %cst_19 = arith.constant dense<0.000000e+00> : vector<2x256xf32>
    %21 = tpu.matmul %7, %20, %cst_19 {dimension_numbers = #tpu.dot_dimension_numbers<[1], [0], [0], [1], [0, 0, 1, 1], [], []>} : vector<2x32xf32>, vector<32x256xf32>, vector<2x256xf32> -> vector<2x256xf32>
    %c0_20 = arith.constant 0 : index
    %c0_21 = arith.constant 0 : index
    %22 = vector.load %arg9[%c0_20, %c0_21] : memref<1x256xf32, #tpu.memory_space<vmem>>, vector<1x256xf32>
    %23 = vector.broadcast %22 : vector<1x256xf32> to vector<2x256xf32>
    %24 = arith.addf %21, %23 : vector<2x256xf32>
    %c0_22 = arith.constant 0 : index
    %c0_23 = arith.constant 0 : index
    %25 = vector.load %arg8[%c0_22, %c0_23] : memref<16x256xf32, #tpu.memory_space<vmem>>, vector<16x256xf32>
    %c0_24 = arith.constant 0 : index
    %c0_25 = arith.constant 0 : index
    %26 = vector.load %arg10[%c0_24, %c0_25] : memref<64x256xf32, #tpu.memory_space<vmem>>, vector<64x256xf32>
    %c0_26 = arith.constant 0 : index
    %c0_27 = arith.constant 0 : index
    %27 = vector.load %arg11[%c0_26, %c0_27] : memref<64x32xf32, #tpu.memory_space<vmem>>, vector<64x32xf32>
    %c0_28 = arith.constant 0 : index
    %c0_29 = arith.constant 0 : index
    %28 = vector.load %arg12[%c0_28, %c0_29] : memref<1x32xf32, #tpu.memory_space<vmem>>, vector<1x32xf32>
    %c0_30 = arith.constant 0 : index
    %c0_31 = arith.constant 0 : index
    %29 = vector.load %arg13[%c0_30, %c0_31] : memref<32x16xf32, #tpu.memory_space<vmem>>, vector<32x16xf32>
    %c0_32 = arith.constant 0 : index
    %c0_33 = arith.constant 0 : index
    %30 = vector.load %arg14[%c0_32, %c0_33] : memref<1x16xf32, #tpu.memory_space<vmem>>, vector<1x16xf32>
    %cst_34 = arith.constant 0.000000e+00 : f32
    %31 = vector.broadcast %cst_34 : f32 to vector<2x64xf32>
    %cst_35 = arith.constant 0.000000e+00 : f32
    %32 = vector.broadcast %cst_35 : f32 to vector<2x64xf32>
    %cst_36 = arith.constant dense<0.000000e+00> : vector<2x256xf32>
    %33 = tpu.matmul %19, %25, %cst_36 {dimension_numbers = #tpu.dot_dimension_numbers<[1], [0], [0], [1], [0, 0, 1, 1], [], []>} : vector<2x16xf32>, vector<16x256xf32>, vector<2x256xf32> -> vector<2x256xf32>
    %34 = arith.addf %24, %33 : vector<2x256xf32>
    %cst_37 = arith.constant dense<0.000000e+00> : vector<2x256xf32>
    %35 = tpu.matmul %31, %26, %cst_37 {dimension_numbers = #tpu.dot_dimension_numbers<[1], [0], [0], [1], [0, 0, 1, 1], [], []>} : vector<2x64xf32>, vector<64x256xf32>, vector<2x256xf32> -> vector<2x256xf32>
    %36 = arith.addf %34, %35 : vector<2x256xf32>
    %37 = arith.negf %36 : vector<2x256xf32>
    %38 = math.exp %37 : vector<2x256xf32>
    %cst_38 = arith.constant 1.000000e+00 : f32
    %39 = vector.broadcast %cst_38 : f32 to vector<2x256xf32>
    %40 = arith.addf %39, %38 : vector<2x256xf32>
    %41 = arith.divf %39, %40 : vector<2x256xf32>
    %42 = vector.extract_strided_slice %36 {offsets = [0, 128], sizes = [2, 64], strides = [1, 1]} : vector<2x256xf32> to vector<2x64xf32>
    %43 = math.tanh %42 : vector<2x64xf32>
    %44 = vector.extract_strided_slice %41 {offsets = [0, 64], sizes = [2, 64], strides = [1, 1]} : vector<2x256xf32> to vector<2x64xf32>
    %45 = arith.mulf %44, %32 : vector<2x64xf32>
    %46 = vector.extract_strided_slice %41 {offsets = [0, 0], sizes = [2, 64], strides = [1, 1]} : vector<2x256xf32> to vector<2x64xf32>
    %47 = arith.mulf %46, %43 : vector<2x64xf32>
    %48 = arith.addf %45, %47 : vector<2x64xf32>
    %49 = vector.extract_strided_slice %41 {offsets = [0, 192], sizes = [2, 64], strides = [1, 1]} : vector<2x256xf32> to vector<2x64xf32>
    %50 = math.tanh %48 : vector<2x64xf32>
    %51 = arith.mulf %49, %50 : vector<2x64xf32>
    %cst_39 = arith.constant dense<0.000000e+00> : vector<2x32xf32>
    %52 = tpu.matmul %51, %27, %cst_39 {dimension_numbers = #tpu.dot_dimension_numbers<[1], [0], [0], [1], [0, 0, 1, 1], [], []>} : vector<2x64xf32>, vector<64x32xf32>, vector<2x32xf32> -> vector<2x32xf32>
    %53 = vector.broadcast %28 : vector<1x32xf32> to vector<2x32xf32>
    %54 = arith.addf %52, %53 : vector<2x32xf32>
    %cst_40 = arith.constant 0.000000e+00 : f32
    %55 = vector.broadcast %cst_40 : f32 to vector<2x32xf32>
    %56 = arith.maximumf %54, %55 : vector<2x32xf32>
    %cst_41 = arith.constant dense<0.000000e+00> : vector<2x16xf32>
    %57 = tpu.matmul %56, %29, %cst_41 {dimension_numbers = #tpu.dot_dimension_numbers<[1], [0], [0], [1], [0, 0, 1, 1], [], []>} : vector<2x32xf32>, vector<32x16xf32>, vector<2x16xf32> -> vector<2x16xf32>
    %58 = vector.broadcast %30 : vector<1x16xf32> to vector<2x16xf32>
    %59 = arith.addf %57, %58 : vector<2x16xf32>
    %cst_42 = arith.constant dense<0.000000e+00> : vector<2x256xf32>
    %60 = tpu.matmul %59, %25, %cst_42 {dimension_numbers = #tpu.dot_dimension_numbers<[1], [0], [0], [1], [0, 0, 1, 1], [], []>} : vector<2x16xf32>, vector<16x256xf32>, vector<2x256xf32> -> vector<2x256xf32>
    %61 = arith.addf %24, %60 : vector<2x256xf32>
    %cst_43 = arith.constant dense<0.000000e+00> : vector<2x256xf32>
    %62 = tpu.matmul %51, %26, %cst_43 {dimension_numbers = #tpu.dot_dimension_numbers<[1], [0], [0], [1], [0, 0, 1, 1], [], []>} : vector<2x64xf32>, vector<64x256xf32>, vector<2x256xf32> -> vector<2x256xf32>
    %63 = arith.addf %61, %62 : vector<2x256xf32>
    %64 = arith.negf %63 : vector<2x256xf32>
    %65 = math.exp %64 : vector<2x256xf32>
    %cst_44 = arith.constant 1.000000e+00 : f32
    %66 = vector.broadcast %cst_44 : f32 to vector<2x256xf32>
    %67 = arith.addf %66, %65 : vector<2x256xf32>
    %68 = arith.divf %66, %67 : vector<2x256xf32>
    %69 = vector.extract_strided_slice %63 {offsets = [0, 128], sizes = [2, 64], strides = [1, 1]} : vector<2x256xf32> to vector<2x64xf32>
    %70 = math.tanh %69 : vector<2x64xf32>
    %71 = vector.extract_strided_slice %68 {offsets = [0, 64], sizes = [2, 64], strides = [1, 1]} : vector<2x256xf32> to vector<2x64xf32>
    %72 = arith.mulf %71, %48 : vector<2x64xf32>
    %73 = vector.extract_strided_slice %68 {offsets = [0, 0], sizes = [2, 64], strides = [1, 1]} : vector<2x256xf32> to vector<2x64xf32>
    %74 = arith.mulf %73, %70 : vector<2x64xf32>
    %75 = arith.addf %72, %74 : vector<2x64xf32>
    %76 = vector.extract_strided_slice %68 {offsets = [0, 192], sizes = [2, 64], strides = [1, 1]} : vector<2x256xf32> to vector<2x64xf32>
    %77 = math.tanh %75 : vector<2x64xf32>
    %78 = arith.mulf %76, %77 : vector<2x64xf32>
    %cst_45 = arith.constant dense<0.000000e+00> : vector<2x32xf32>
    %79 = tpu.matmul %78, %27, %cst_45 {dimension_numbers = #tpu.dot_dimension_numbers<[1], [0], [0], [1], [0, 0, 1, 1], [], []>} : vector<2x64xf32>, vector<64x32xf32>, vector<2x32xf32> -> vector<2x32xf32>
    %80 = vector.broadcast %28 : vector<1x32xf32> to vector<2x32xf32>
    %81 = arith.addf %79, %80 : vector<2x32xf32>
    %cst_46 = arith.constant 0.000000e+00 : f32
    %82 = vector.broadcast %cst_46 : f32 to vector<2x32xf32>
    %83 = arith.maximumf %81, %82 : vector<2x32xf32>
    %cst_47 = arith.constant dense<0.000000e+00> : vector<2x16xf32>
    %84 = tpu.matmul %83, %29, %cst_47 {dimension_numbers = #tpu.dot_dimension_numbers<[1], [0], [0], [1], [0, 0, 1, 1], [], []>} : vector<2x32xf32>, vector<32x16xf32>, vector<2x16xf32> -> vector<2x16xf32>
    %85 = vector.broadcast %30 : vector<1x16xf32> to vector<2x16xf32>
    %86 = arith.addf %84, %85 : vector<2x16xf32>
    %cst_48 = arith.constant dense<0.000000e+00> : vector<2x256xf32>
    %87 = tpu.matmul %86, %25, %cst_48 {dimension_numbers = #tpu.dot_dimension_numbers<[1], [0], [0], [1], [0, 0, 1, 1], [], []>} : vector<2x16xf32>, vector<16x256xf32>, vector<2x256xf32> -> vector<2x256xf32>
    %88 = arith.addf %24, %87 : vector<2x256xf32>
    %cst_49 = arith.constant dense<0.000000e+00> : vector<2x256xf32>
    %89 = tpu.matmul %78, %26, %cst_49 {dimension_numbers = #tpu.dot_dimension_numbers<[1], [0], [0], [1], [0, 0, 1, 1], [], []>} : vector<2x64xf32>, vector<64x256xf32>, vector<2x256xf32> -> vector<2x256xf32>
    %90 = arith.addf %88, %89 : vector<2x256xf32>
    %91 = arith.negf %90 : vector<2x256xf32>
    %92 = math.exp %91 : vector<2x256xf32>
    %cst_50 = arith.constant 1.000000e+00 : f32
    %93 = vector.broadcast %cst_50 : f32 to vector<2x256xf32>
    %94 = arith.addf %93, %92 : vector<2x256xf32>
    %95 = arith.divf %93, %94 : vector<2x256xf32>
    %96 = vector.extract_strided_slice %90 {offsets = [0, 128], sizes = [2, 64], strides = [1, 1]} : vector<2x256xf32> to vector<2x64xf32>
    %97 = math.tanh %96 : vector<2x64xf32>
    %98 = vector.extract_strided_slice %95 {offsets = [0, 64], sizes = [2, 64], strides = [1, 1]} : vector<2x256xf32> to vector<2x64xf32>
    %99 = arith.mulf %98, %75 : vector<2x64xf32>
    %100 = vector.extract_strided_slice %95 {offsets = [0, 0], sizes = [2, 64], strides = [1, 1]} : vector<2x256xf32> to vector<2x64xf32>
    %101 = arith.mulf %100, %97 : vector<2x64xf32>
    %102 = arith.addf %99, %101 : vector<2x64xf32>
    %103 = vector.extract_strided_slice %95 {offsets = [0, 192], sizes = [2, 64], strides = [1, 1]} : vector<2x256xf32> to vector<2x64xf32>
    %104 = math.tanh %102 : vector<2x64xf32>
    %105 = arith.mulf %103, %104 : vector<2x64xf32>
    %cst_51 = arith.constant dense<0.000000e+00> : vector<2x32xf32>
    %106 = tpu.matmul %105, %27, %cst_51 {dimension_numbers = #tpu.dot_dimension_numbers<[1], [0], [0], [1], [0, 0, 1, 1], [], []>} : vector<2x64xf32>, vector<64x32xf32>, vector<2x32xf32> -> vector<2x32xf32>
    %107 = vector.broadcast %28 : vector<1x32xf32> to vector<2x32xf32>
    %108 = arith.addf %106, %107 : vector<2x32xf32>
    %cst_52 = arith.constant 0.000000e+00 : f32
    %109 = vector.broadcast %cst_52 : f32 to vector<2x32xf32>
    %110 = arith.maximumf %108, %109 : vector<2x32xf32>
    %cst_53 = arith.constant dense<0.000000e+00> : vector<2x16xf32>
    %111 = tpu.matmul %110, %29, %cst_53 {dimension_numbers = #tpu.dot_dimension_numbers<[1], [0], [0], [1], [0, 0, 1, 1], [], []>} : vector<2x32xf32>, vector<32x16xf32>, vector<2x16xf32> -> vector<2x16xf32>
    %112 = vector.broadcast %30 : vector<1x16xf32> to vector<2x16xf32>
    %113 = arith.addf %111, %112 : vector<2x16xf32>
    %cst_54 = arith.constant dense<0.000000e+00> : vector<2x256xf32>
    %114 = tpu.matmul %113, %25, %cst_54 {dimension_numbers = #tpu.dot_dimension_numbers<[1], [0], [0], [1], [0, 0, 1, 1], [], []>} : vector<2x16xf32>, vector<16x256xf32>, vector<2x256xf32> -> vector<2x256xf32>
    %115 = arith.addf %24, %114 : vector<2x256xf32>
    %cst_55 = arith.constant dense<0.000000e+00> : vector<2x256xf32>
    %116 = tpu.matmul %105, %26, %cst_55 {dimension_numbers = #tpu.dot_dimension_numbers<[1], [0], [0], [1], [0, 0, 1, 1], [], []>} : vector<2x64xf32>, vector<64x256xf32>, vector<2x256xf32> -> vector<2x256xf32>
    %117 = arith.addf %115, %116 : vector<2x256xf32>
    %118 = arith.negf %117 : vector<2x256xf32>
    %119 = math.exp %118 : vector<2x256xf32>
    %cst_56 = arith.constant 1.000000e+00 : f32
    %120 = vector.broadcast %cst_56 : f32 to vector<2x256xf32>
    %121 = arith.addf %120, %119 : vector<2x256xf32>
    %122 = arith.divf %120, %121 : vector<2x256xf32>
    %123 = vector.extract_strided_slice %117 {offsets = [0, 128], sizes = [2, 64], strides = [1, 1]} : vector<2x256xf32> to vector<2x64xf32>
    %124 = math.tanh %123 : vector<2x64xf32>
    %125 = vector.extract_strided_slice %122 {offsets = [0, 64], sizes = [2, 64], strides = [1, 1]} : vector<2x256xf32> to vector<2x64xf32>
    %126 = arith.mulf %125, %102 : vector<2x64xf32>
    %127 = vector.extract_strided_slice %122 {offsets = [0, 0], sizes = [2, 64], strides = [1, 1]} : vector<2x256xf32> to vector<2x64xf32>
    %128 = arith.mulf %127, %124 : vector<2x64xf32>
    %129 = arith.addf %126, %128 : vector<2x64xf32>
    %130 = vector.extract_strided_slice %122 {offsets = [0, 192], sizes = [2, 64], strides = [1, 1]} : vector<2x256xf32> to vector<2x64xf32>
    %131 = math.tanh %129 : vector<2x64xf32>
    %132 = arith.mulf %130, %131 : vector<2x64xf32>
    %cst_57 = arith.constant dense<0.000000e+00> : vector<2x32xf32>
    %133 = tpu.matmul %132, %27, %cst_57 {dimension_numbers = #tpu.dot_dimension_numbers<[1], [0], [0], [1], [0, 0, 1, 1], [], []>} : vector<2x64xf32>, vector<64x32xf32>, vector<2x32xf32> -> vector<2x32xf32>
    %134 = vector.broadcast %28 : vector<1x32xf32> to vector<2x32xf32>
    %135 = arith.addf %133, %134 : vector<2x32xf32>
    %cst_58 = arith.constant 0.000000e+00 : f32
    %136 = vector.broadcast %cst_58 : f32 to vector<2x32xf32>
    %137 = arith.maximumf %135, %136 : vector<2x32xf32>
    %cst_59 = arith.constant dense<0.000000e+00> : vector<2x16xf32>
    %138 = tpu.matmul %137, %29, %cst_59 {dimension_numbers = #tpu.dot_dimension_numbers<[1], [0], [0], [1], [0, 0, 1, 1], [], []>} : vector<2x32xf32>, vector<32x16xf32>, vector<2x16xf32> -> vector<2x16xf32>
    %139 = vector.broadcast %30 : vector<1x16xf32> to vector<2x16xf32>
    %140 = arith.addf %138, %139 : vector<2x16xf32>
    %cst_60 = arith.constant dense<0.000000e+00> : vector<2x256xf32>
    %141 = tpu.matmul %140, %25, %cst_60 {dimension_numbers = #tpu.dot_dimension_numbers<[1], [0], [0], [1], [0, 0, 1, 1], [], []>} : vector<2x16xf32>, vector<16x256xf32>, vector<2x256xf32> -> vector<2x256xf32>
    %142 = arith.addf %24, %141 : vector<2x256xf32>
    %cst_61 = arith.constant dense<0.000000e+00> : vector<2x256xf32>
    %143 = tpu.matmul %132, %26, %cst_61 {dimension_numbers = #tpu.dot_dimension_numbers<[1], [0], [0], [1], [0, 0, 1, 1], [], []>} : vector<2x64xf32>, vector<64x256xf32>, vector<2x256xf32> -> vector<2x256xf32>
    %144 = arith.addf %142, %143 : vector<2x256xf32>
    %145 = arith.negf %144 : vector<2x256xf32>
    %146 = math.exp %145 : vector<2x256xf32>
    %cst_62 = arith.constant 1.000000e+00 : f32
    %147 = vector.broadcast %cst_62 : f32 to vector<2x256xf32>
    %148 = arith.addf %147, %146 : vector<2x256xf32>
    %149 = arith.divf %147, %148 : vector<2x256xf32>
    %150 = vector.extract_strided_slice %144 {offsets = [0, 128], sizes = [2, 64], strides = [1, 1]} : vector<2x256xf32> to vector<2x64xf32>
    %151 = math.tanh %150 : vector<2x64xf32>
    %152 = vector.extract_strided_slice %149 {offsets = [0, 64], sizes = [2, 64], strides = [1, 1]} : vector<2x256xf32> to vector<2x64xf32>
    %153 = arith.mulf %152, %129 : vector<2x64xf32>
    %154 = vector.extract_strided_slice %149 {offsets = [0, 0], sizes = [2, 64], strides = [1, 1]} : vector<2x256xf32> to vector<2x64xf32>
    %155 = arith.mulf %154, %151 : vector<2x64xf32>
    %156 = arith.addf %153, %155 : vector<2x64xf32>
    %157 = vector.extract_strided_slice %149 {offsets = [0, 192], sizes = [2, 64], strides = [1, 1]} : vector<2x256xf32> to vector<2x64xf32>
    %158 = math.tanh %156 : vector<2x64xf32>
    %159 = arith.mulf %157, %158 : vector<2x64xf32>
    %cst_63 = arith.constant dense<0.000000e+00> : vector<2x32xf32>
    %160 = tpu.matmul %159, %27, %cst_63 {dimension_numbers = #tpu.dot_dimension_numbers<[1], [0], [0], [1], [0, 0, 1, 1], [], []>} : vector<2x64xf32>, vector<64x32xf32>, vector<2x32xf32> -> vector<2x32xf32>
    %161 = vector.broadcast %28 : vector<1x32xf32> to vector<2x32xf32>
    %162 = arith.addf %160, %161 : vector<2x32xf32>
    %cst_64 = arith.constant 0.000000e+00 : f32
    %163 = vector.broadcast %cst_64 : f32 to vector<2x32xf32>
    %164 = arith.maximumf %162, %163 : vector<2x32xf32>
    %cst_65 = arith.constant dense<0.000000e+00> : vector<2x16xf32>
    %165 = tpu.matmul %164, %29, %cst_65 {dimension_numbers = #tpu.dot_dimension_numbers<[1], [0], [0], [1], [0, 0, 1, 1], [], []>} : vector<2x32xf32>, vector<32x16xf32>, vector<2x16xf32> -> vector<2x16xf32>
    %166 = vector.broadcast %30 : vector<1x16xf32> to vector<2x16xf32>
    %167 = arith.addf %165, %166 : vector<2x16xf32>
    %cst_66 = arith.constant dense<0.000000e+00> : vector<2x256xf32>
    %168 = tpu.matmul %167, %25, %cst_66 {dimension_numbers = #tpu.dot_dimension_numbers<[1], [0], [0], [1], [0, 0, 1, 1], [], []>} : vector<2x16xf32>, vector<16x256xf32>, vector<2x256xf32> -> vector<2x256xf32>
    %169 = arith.addf %24, %168 : vector<2x256xf32>
    %cst_67 = arith.constant dense<0.000000e+00> : vector<2x256xf32>
    %170 = tpu.matmul %159, %26, %cst_67 {dimension_numbers = #tpu.dot_dimension_numbers<[1], [0], [0], [1], [0, 0, 1, 1], [], []>} : vector<2x64xf32>, vector<64x256xf32>, vector<2x256xf32> -> vector<2x256xf32>
    %171 = arith.addf %169, %170 : vector<2x256xf32>
    %172 = arith.negf %171 : vector<2x256xf32>
    %173 = math.exp %172 : vector<2x256xf32>
    %cst_68 = arith.constant 1.000000e+00 : f32
    %174 = vector.broadcast %cst_68 : f32 to vector<2x256xf32>
    %175 = arith.addf %174, %173 : vector<2x256xf32>
    %176 = arith.divf %174, %175 : vector<2x256xf32>
    %177 = vector.extract_strided_slice %171 {offsets = [0, 128], sizes = [2, 64], strides = [1, 1]} : vector<2x256xf32> to vector<2x64xf32>
    %178 = math.tanh %177 : vector<2x64xf32>
    %179 = vector.extract_strided_slice %176 {offsets = [0, 64], sizes = [2, 64], strides = [1, 1]} : vector<2x256xf32> to vector<2x64xf32>
    %180 = arith.mulf %179, %156 : vector<2x64xf32>
    %181 = vector.extract_strided_slice %176 {offsets = [0, 0], sizes = [2, 64], strides = [1, 1]} : vector<2x256xf32> to vector<2x64xf32>
    %182 = arith.mulf %181, %178 : vector<2x64xf32>
    %183 = arith.addf %180, %182 : vector<2x64xf32>
    %184 = vector.extract_strided_slice %176 {offsets = [0, 192], sizes = [2, 64], strides = [1, 1]} : vector<2x256xf32> to vector<2x64xf32>
    %185 = math.tanh %183 : vector<2x64xf32>
    %186 = arith.mulf %184, %185 : vector<2x64xf32>
    %cst_69 = arith.constant dense<0.000000e+00> : vector<2x32xf32>
    %187 = tpu.matmul %186, %27, %cst_69 {dimension_numbers = #tpu.dot_dimension_numbers<[1], [0], [0], [1], [0, 0, 1, 1], [], []>} : vector<2x64xf32>, vector<64x32xf32>, vector<2x32xf32> -> vector<2x32xf32>
    %188 = vector.broadcast %28 : vector<1x32xf32> to vector<2x32xf32>
    %189 = arith.addf %187, %188 : vector<2x32xf32>
    %cst_70 = arith.constant 0.000000e+00 : f32
    %190 = vector.broadcast %cst_70 : f32 to vector<2x32xf32>
    %191 = arith.maximumf %189, %190 : vector<2x32xf32>
    %cst_71 = arith.constant dense<0.000000e+00> : vector<2x16xf32>
    %192 = tpu.matmul %191, %29, %cst_71 {dimension_numbers = #tpu.dot_dimension_numbers<[1], [0], [0], [1], [0, 0, 1, 1], [], []>} : vector<2x32xf32>, vector<32x16xf32>, vector<2x16xf32> -> vector<2x16xf32>
    %193 = vector.broadcast %30 : vector<1x16xf32> to vector<2x16xf32>
    %194 = arith.addf %192, %193 : vector<2x16xf32>
    %cst_72 = arith.constant dense<0.000000e+00> : vector<2x256xf32>
    %195 = tpu.matmul %194, %25, %cst_72 {dimension_numbers = #tpu.dot_dimension_numbers<[1], [0], [0], [1], [0, 0, 1, 1], [], []>} : vector<2x16xf32>, vector<16x256xf32>, vector<2x256xf32> -> vector<2x256xf32>
    %196 = arith.addf %24, %195 : vector<2x256xf32>
    %cst_73 = arith.constant dense<0.000000e+00> : vector<2x256xf32>
    %197 = tpu.matmul %186, %26, %cst_73 {dimension_numbers = #tpu.dot_dimension_numbers<[1], [0], [0], [1], [0, 0, 1, 1], [], []>} : vector<2x64xf32>, vector<64x256xf32>, vector<2x256xf32> -> vector<2x256xf32>
    %198 = arith.addf %196, %197 : vector<2x256xf32>
    %199 = arith.negf %198 : vector<2x256xf32>
    %200 = math.exp %199 : vector<2x256xf32>
    %cst_74 = arith.constant 1.000000e+00 : f32
    %201 = vector.broadcast %cst_74 : f32 to vector<2x256xf32>
    %202 = arith.addf %201, %200 : vector<2x256xf32>
    %203 = arith.divf %201, %202 : vector<2x256xf32>
    %204 = vector.extract_strided_slice %198 {offsets = [0, 128], sizes = [2, 64], strides = [1, 1]} : vector<2x256xf32> to vector<2x64xf32>
    %205 = math.tanh %204 : vector<2x64xf32>
    %206 = vector.extract_strided_slice %203 {offsets = [0, 64], sizes = [2, 64], strides = [1, 1]} : vector<2x256xf32> to vector<2x64xf32>
    %207 = arith.mulf %206, %183 : vector<2x64xf32>
    %208 = vector.extract_strided_slice %203 {offsets = [0, 0], sizes = [2, 64], strides = [1, 1]} : vector<2x256xf32> to vector<2x64xf32>
    %209 = arith.mulf %208, %205 : vector<2x64xf32>
    %210 = arith.addf %207, %209 : vector<2x64xf32>
    %211 = vector.extract_strided_slice %203 {offsets = [0, 192], sizes = [2, 64], strides = [1, 1]} : vector<2x256xf32> to vector<2x64xf32>
    %212 = math.tanh %210 : vector<2x64xf32>
    %213 = arith.mulf %211, %212 : vector<2x64xf32>
    %cst_75 = arith.constant dense<0.000000e+00> : vector<2x32xf32>
    %214 = tpu.matmul %213, %27, %cst_75 {dimension_numbers = #tpu.dot_dimension_numbers<[1], [0], [0], [1], [0, 0, 1, 1], [], []>} : vector<2x64xf32>, vector<64x32xf32>, vector<2x32xf32> -> vector<2x32xf32>
    %215 = vector.broadcast %28 : vector<1x32xf32> to vector<2x32xf32>
    %216 = arith.addf %214, %215 : vector<2x32xf32>
    %cst_76 = arith.constant 0.000000e+00 : f32
    %217 = vector.broadcast %cst_76 : f32 to vector<2x32xf32>
    %218 = arith.maximumf %216, %217 : vector<2x32xf32>
    %cst_77 = arith.constant dense<0.000000e+00> : vector<2x16xf32>
    %219 = tpu.matmul %218, %29, %cst_77 {dimension_numbers = #tpu.dot_dimension_numbers<[1], [0], [0], [1], [0, 0, 1, 1], [], []>} : vector<2x32xf32>, vector<32x16xf32>, vector<2x16xf32> -> vector<2x16xf32>
    %220 = vector.broadcast %30 : vector<1x16xf32> to vector<2x16xf32>
    %221 = arith.addf %219, %220 : vector<2x16xf32>
    %cst_78 = arith.constant dense<0.000000e+00> : vector<2x256xf32>
    %222 = tpu.matmul %221, %25, %cst_78 {dimension_numbers = #tpu.dot_dimension_numbers<[1], [0], [0], [1], [0, 0, 1, 1], [], []>} : vector<2x16xf32>, vector<16x256xf32>, vector<2x256xf32> -> vector<2x256xf32>
    %223 = arith.addf %24, %222 : vector<2x256xf32>
    %cst_79 = arith.constant dense<0.000000e+00> : vector<2x256xf32>
    %224 = tpu.matmul %213, %26, %cst_79 {dimension_numbers = #tpu.dot_dimension_numbers<[1], [0], [0], [1], [0, 0, 1, 1], [], []>} : vector<2x64xf32>, vector<64x256xf32>, vector<2x256xf32> -> vector<2x256xf32>
    %225 = arith.addf %223, %224 : vector<2x256xf32>
    %226 = arith.negf %225 : vector<2x256xf32>
    %227 = math.exp %226 : vector<2x256xf32>
    %cst_80 = arith.constant 1.000000e+00 : f32
    %228 = vector.broadcast %cst_80 : f32 to vector<2x256xf32>
    %229 = arith.addf %228, %227 : vector<2x256xf32>
    %230 = arith.divf %228, %229 : vector<2x256xf32>
    %231 = vector.extract_strided_slice %225 {offsets = [0, 128], sizes = [2, 64], strides = [1, 1]} : vector<2x256xf32> to vector<2x64xf32>
    %232 = math.tanh %231 : vector<2x64xf32>
    %233 = vector.extract_strided_slice %230 {offsets = [0, 64], sizes = [2, 64], strides = [1, 1]} : vector<2x256xf32> to vector<2x64xf32>
    %234 = arith.mulf %233, %210 : vector<2x64xf32>
    %235 = vector.extract_strided_slice %230 {offsets = [0, 0], sizes = [2, 64], strides = [1, 1]} : vector<2x256xf32> to vector<2x64xf32>
    %236 = arith.mulf %235, %232 : vector<2x64xf32>
    %237 = arith.addf %234, %236 : vector<2x64xf32>
    %238 = vector.extract_strided_slice %230 {offsets = [0, 192], sizes = [2, 64], strides = [1, 1]} : vector<2x256xf32> to vector<2x64xf32>
    %239 = math.tanh %237 : vector<2x64xf32>
    %240 = arith.mulf %238, %239 : vector<2x64xf32>
    %cst_81 = arith.constant dense<0.000000e+00> : vector<2x32xf32>
    %241 = tpu.matmul %240, %27, %cst_81 {dimension_numbers = #tpu.dot_dimension_numbers<[1], [0], [0], [1], [0, 0, 1, 1], [], []>} : vector<2x64xf32>, vector<64x32xf32>, vector<2x32xf32> -> vector<2x32xf32>
    %242 = vector.broadcast %28 : vector<1x32xf32> to vector<2x32xf32>
    %243 = arith.addf %241, %242 : vector<2x32xf32>
    %cst_82 = arith.constant 0.000000e+00 : f32
    %244 = vector.broadcast %cst_82 : f32 to vector<2x32xf32>
    %245 = arith.maximumf %243, %244 : vector<2x32xf32>
    %cst_83 = arith.constant dense<0.000000e+00> : vector<2x16xf32>
    %246 = tpu.matmul %245, %29, %cst_83 {dimension_numbers = #tpu.dot_dimension_numbers<[1], [0], [0], [1], [0, 0, 1, 1], [], []>} : vector<2x32xf32>, vector<32x16xf32>, vector<2x16xf32> -> vector<2x16xf32>
    %247 = vector.broadcast %30 : vector<1x16xf32> to vector<2x16xf32>
    %248 = arith.addf %246, %247 : vector<2x16xf32>
    %249 = tpu.concatenate %59, %86, %113, %140, %167, %194, %221, %248 in 1 : vector<2x16xf32>, vector<2x16xf32>, vector<2x16xf32>, vector<2x16xf32>, vector<2x16xf32>, vector<2x16xf32>, vector<2x16xf32>, vector<2x16xf32> -> vector<2x128xf32>
    %c0_84 = arith.constant 0 : index
    %c0_85 = arith.constant 0 : index
    %250 = vector.load %arg15[%c0_84, %c0_85] : memref<2x128xf32, #tpu.memory_space<vmem>>, vector<2x128xf32>
    tpu.vector_store %arg15[%c0_84, %c0_85], %249 {strides = array<i32>} : memref<2x128xf32, #tpu.memory_space<vmem>>, vector<2x128xf32>,
    return
  }
}

</mosaic_0001>

<bundles_post_ra>
// kernel: tpu_custom_call.1
= control target key start
LH: loop header
LB: loop body
LE: loop exit
PB: predicated region body
PF: predicated region fallthrough
CT: control target
= control target key end

     0   :  { %s5068_s0 = inlined_call_operand.hbm [shape: f32[2,32], index: 0, kind: input, shape index: {}]   ;;  %s5069_s1 = inlined_call_operand.hbm [shape: f32[32,32], index: 1, kind: input, shape index: {}]   ;;  %s5070_s2 = inlined_call_operand.vmem [shape: f32[1,32], index: 2, kind: input, shape index: {}]   ;;  %s5071_s3 = inlined_call_operand.hbm [shape: f32[32,32], index: 3, kind: input, shape index: {}]   ;;  %s5072_s4 = inlined_call_operand.hbm [shape: f32[1,32], index: 4, kind: input, shape index: {}]   ;;  %s5073_s5 = inlined_call_operand.vmem [shape: f32[32,16], index: 5, kind: input, shape index: {}]   ;;  %s5074_s6 = inlined_call_operand.hbm [shape: f32[1,16], index: 6, kind: input, shape index: {}]   ;;  %s5075_s7 = inlined_call_operand.vmem [shape: f32[32,256], index: 7, kind: input, shape index: {}]   ;;  %s5076_s8 = inlined_call_operand.hbm [shape: f32[16,256], index: 8, kind: input, shape index: {}]   ;;  %s5077_s9 = inlined_call_operand.hbm [shape: f32[1,256], index: 9, kind: input, shape index: {}]   ;;  %s5078_s10 = inlined_call_operand.vmem [shape: f32[64,256], index: 10, kind: input, shape index: {}]   ;;  %s5079_s11 = inlined_call_operand.vmem [shape: f32[64,32], index: 11, kind: input, shape index: {}]   ;;  %s5080_s12 = inlined_call_operand.hbm [shape: f32[1,32], index: 12, kind: input, shape index: {}]   ;;  %s5081_s13 = inlined_call_operand.vmem [shape: f32[32,16], index: 13, kind: input, shape index: {}]   ;;  %s5082_s14 = inlined_call_operand.vmem [shape: f32[1,16], index: 14, kind: input, shape index: {}]   ;;  %s5083_s15 = inlined_call_operand.hbm [shape: f32[2,128], index: 15, kind: output, shape index: {}]  }
   0x1   :  { %5085 = sst [smem:[#allocation23_spill]] %s5083_s15 }
   0x2   :  { %20 = vsyncpa [#allocation3], 0 }
   0x3   :  { %21 = vsyncpa [#allocation6], 0 }
   0x4   :  { %22 = vsyncpa [#allocation9], 0 }
   0x5   :  { %23 = vsyncpa [#allocation12], 0 }
   0x6   :  { %24 = vsyncpa [#allocation15], 0 }
   0x7   :  { %25 = vsyncpa [#allocation4], 0  ;;  %s4307_s18 = smov [#allocation5]   ;;  %s4097_s22 = scalar_lea.hbm %s5069_s1, 512 }
   0x8   :  { %s41_s19 = sshll.u32 %s4307_s18, 4  ;;  %p4098_p0 = scmp.ne.s32.totalorder %s5069_s1, %s4097_s22  ;;  %s42_s19 = int_to_ptr.vmem [resolvable:$true] %s41_s19 }
   0x9   :  { %p4101_p1 = scmp.lt.u32.totalorder %s4097_s22, %s5069_s1 }
   0xb   :  { %p4103_p2 = pnand %p4101_p1, %p4098_p0 }
   0xd   :  { %4106 = shalt.err (!%p4103_p2)
}
   0xe   :  { %s4107_s27 = scalar_lea.vmem %s42_s19, 512  ;;  %p4112_p4 = scmp.lt.s32.totalorder %s42_s19, %s42_s19 }
   0xf   :  { %p4108_p3 = scmp.ne.s32.totalorder %s42_s19, %s4107_s27  ;;  %p4113_p5 = scmp.lt.s32.totalorder %s4107_s27, %s4107_s27 }
  0x11   :  { %p4114_p6 = por %p4113_p5, %p4112_p4 }
  0x13   :  { %p4115_p7 = pnand %p4114_p6, %p4108_p3 }
  0x15   :  { %4118 = shalt.err (!%p4115_p7)
}
  0x16   :  { %s4308_s28 = smov 128   ;;  %s4309_s29 = smov 8  }
  0x17   :  { %47 = dma.hbm_to_vmem [thread:$0]  %s5069_s1, 512, %s42_s19, [#allocation6], %s4308_s28, %s4308_s28, %s4309_s29  }
  0x18   :  { %s4310_s17 = smov [#allocation8]   ;;  %s4311_s20 = smov [#allocation11]  }
  0x19   :  { %s68_s18 = sshll.u32 %s4310_s17, 4  ;;  %s91_s21 = sshll.u32 %s4311_s20, 4  ;;  %s69_s18 = int_to_ptr.vmem [resolvable:$true] %s68_s18  ;;  %s92_s21 = int_to_ptr.vmem [resolvable:$true] %s91_s21 }
  0x1a   :  { %s4119_s24 = scalar_lea.hbm %s5072_s4, 16 }
  0x1b   :  { %p4120_p8 = scmp.ne.s32.totalorder %s5072_s4, %s4119_s24  ;;  %p4123_p9 = scmp.lt.u32.totalorder %s4119_s24, %s5072_s4 }
  0x1d   :  { %p4125_p10 = pnand %p4123_p9, %p4120_p8 }
  0x1f   :  { %4128 = shalt.err (!%p4125_p10)
}
  0x20   :  { %s4129_s1 = scalar_lea.vmem %s69_s18, 16  ;;  %s4133_s19 = scalar_lea.vmem %s69_s18, 32 }
  0x21   :  { %p4130_p11 = scmp.ne.s32.totalorder %s69_s18, %s4129_s1  ;;  %p4134_p12 = scmp.lt.s32.totalorder %s69_s18, %s69_s18 }
  0x22   :  { %p4135_p13 = scmp.lt.s32.totalorder %s4133_s19, %s4129_s1 }
  0x24   :  { %p4136_p0 = por %p4135_p13, %p4134_p12 }
  0x26   :  { %p4137_p1 = pnand %p4136_p0, %p4130_p11 }
  0x28   :  { %4140 = shalt.err (!%p4137_p1)
}
  0x29   :  { %71 = dma.hbm_to_vmem [thread:$0]  %s5072_s4, 16, %s69_s18, [#allocation9]  }
  0x2a   :  { %s4141_s15 = scalar_lea.hbm %s5076_s8, 512 }
  0x2b   :  { %p4142_p2 = scmp.ne.s32.totalorder %s5076_s8, %s4141_s15  ;;  %p4145_p3 = scmp.lt.u32.totalorder %s4141_s15, %s5076_s8 }
  0x2d   :  { %p4147_p4 = pnand %p4145_p3, %p4142_p2 }
  0x2f   :  { %4150 = shalt.err (!%p4147_p4)
}
  0x30   :  { %s4151_s26 = scalar_lea.vmem %s92_s21, 512  ;;  %p4156_p6 = scmp.lt.s32.totalorder %s92_s21, %s92_s21 }
  0x31   :  { %p4152_p5 = scmp.ne.s32.totalorder %s92_s21, %s4151_s26  ;;  %p4157_p7 = scmp.lt.s32.totalorder %s4151_s26, %s4151_s26 }
  0x33   :  { %p4158_p8 = por %p4157_p7, %p4156_p6 }
  0x35   :  { %p4159_p9 = pnand %p4158_p8, %p4152_p5 }
  0x37   :  { %4162 = shalt.err (!%p4159_p9)
}
  0x38   :  { %s4312_s4 = smov 256   ;;  %s4313_s18 = smov 16  }
  0x39   :  { %97 = dma.hbm_to_vmem [thread:$0]  %s5076_s8, 512, %s92_s21, [#allocation12], %s4312_s4, %s4312_s4, %s4313_s18  }
  0x3a   :  { %s4314_s19 = smov [#allocation2]   ;;  %s4315_s16 = smov [#allocation7]  }
  0x3b   :  { %s32_s30 = sshll.u32 %s4314_s19, 4  ;;  %s55_s17 = sshll.u32 %s4315_s16, 4  ;;  %s33_s30 = int_to_ptr.vmem [resolvable:$true] %s32_s30  ;;  %s56_s17 = int_to_ptr.vmem [resolvable:$true] %s55_s17 }
  0x3c   :  { %s4163_s22 = scalar_lea.hbm %s5068_s0, 32 }
  0x3d   :  { %p4164_p10 = scmp.ne.s32.totalorder %s5068_s0, %s4163_s22  ;;  %p4167_p11 = scmp.lt.u32.totalorder %s4163_s22, %s5068_s0 }
  0x3f   :  { %p4169_p12 = pnand %p4167_p11, %p4164_p10 }
  0x41   :  { %4172 = shalt.err (!%p4169_p12)
}
  0x42   :  { %s4173_s8 = scalar_lea.vmem %s33_s30, 32  ;;  %p4178_p0 = scmp.lt.s32.totalorder %s33_s30, %s33_s30 }
  0x43   :  { %p4174_p13 = scmp.ne.s32.totalorder %s33_s30, %s4173_s8  ;;  %p4179_p1 = scmp.lt.s32.totalorder %s4173_s8, %s4173_s8 }
  0x45   :  { %p4180_p2 = por %p4179_p1, %p4178_p0 }
  0x47   :  { %p4181_p3 = pnand %p4180_p2, %p4174_p13 }
  0x49   :  { %4184 = shalt.err (!%p4181_p3)
}
  0x4a   :  { %35 = dma.hbm_to_vmem [thread:$0]  %s5068_s0, 32, %s33_s30, [#allocation3]  }
  0x4b   :  { %s4185_s19 = scalar_lea.hbm %s5071_s3, 512 }
  0x4c   :  { %p4186_p4 = scmp.ne.s32.totalorder %s5071_s3, %s4185_s19  ;;  %p4189_p5 = scmp.lt.u32.totalorder %s4185_s19, %s5071_s3 }
  0x4e   :  { %p4191_p6 = pnand %p4189_p5, %p4186_p4 }
  0x50   :  { %4194 = shalt.err (!%p4191_p6)
}
  0x51   :  { %s4195_s23 = scalar_lea.vmem %s56_s17, 512  ;;  %p4200_p8 = scmp.lt.s32.totalorder %s56_s17, %s56_s17 }
  0x52   :  { %p4196_p7 = scmp.ne.s32.totalorder %s56_s17, %s4195_s23  ;;  %p4201_p9 = scmp.lt.s32.totalorder %s4195_s23, %s4195_s23 }
  0x54   :  { %p4202_p10 = por %p4201_p9, %p4200_p8 }
  0x56   :  { %p4203_p11 = pnand %p4202_p10, %p4196_p7 }
  0x58   :  { %4206 = shalt.err (!%p4203_p11)
}
  0x59   :  { %61 = dma.hbm_to_vmem [thread:$0]  %s5071_s3, 512, %s56_s17, [#allocation6], %s4308_s28, %s4308_s28, %s4309_s29  }
  0x5a   :  { %s4316_s24 = smov [#allocation10]   ;;  %s4317_s26 = smov [#allocation13]  }
  0x5b   :  { %s80_s25 = sshll.u32 %s4316_s24, 4  ;;  %s104_s8 = sshll.u32 %s4317_s26, 4  ;;  %s81_s25 = int_to_ptr.vmem [resolvable:$true] %s80_s25  ;;  %s105_s8 = int_to_ptr.vmem [resolvable:$true] %s104_s8 }
  0x5c   :  { %s4207_s27 = scalar_lea.hbm %s5074_s6, 16 }
  0x5d   :  { %p4208_p12 = scmp.ne.s32.totalorder %s5074_s6, %s4207_s27  ;;  %p4211_p13 = scmp.lt.u32.totalorder %s4207_s27, %s5074_s6 }
  0x5f   :  { %p4213_p0 = pnand %p4211_p13, %p4208_p12 }
  0x61   :  { %4216 = shalt.err (!%p4213_p0)
}
  0x62   :  { %s4217_s3 = scalar_lea.vmem %s81_s25, 16  ;;  %s4221_s28 = scalar_lea.vmem %s81_s25, 32 }
  0x63   :  { %p4218_p1 = scmp.ne.s32.totalorder %s81_s25, %s4217_s3  ;;  %p4222_p2 = scmp.lt.s32.totalorder %s81_s25, %s81_s25 }
  0x64   :  { %p4223_p3 = scmp.lt.s32.totalorder %s4221_s28, %s4217_s3 }
  0x66   :  { %p4224_p4 = por %p4223_p3, %p4222_p2 }
  0x68   :  { %p4225_p5 = pnand %p4224_p4, %p4218_p1 }
  0x6a   :  { %4228 = shalt.err (!%p4225_p5)
}
  0x6b   :  { %83 = dma.hbm_to_vmem [thread:$0]  %s5074_s6, 16, %s81_s25, [#allocation9]  }
  0x6c   :  { %s4229_s23 = scalar_lea.hbm %s5077_s9, 32 }
  0x6d   :  { %p4230_p6 = scmp.ne.s32.totalorder %s5077_s9, %s4229_s23  ;;  %p4233_p7 = scmp.lt.u32.totalorder %s4229_s23, %s5077_s9 }
  0x6f   :  { %p4235_p8 = pnand %p4233_p7, %p4230_p6 }
  0x71   :  { %4238 = shalt.err (!%p4235_p8)
}
  0x72   :  { %s4239_s21 = scalar_lea.vmem %s105_s8, 32  ;;  %p4244_p10 = scmp.lt.s32.totalorder %s105_s8, %s105_s8 }
  0x73   :  { %p4240_p9 = scmp.ne.s32.totalorder %s105_s8, %s4239_s21  ;;  %p4245_p11 = scmp.lt.s32.totalorder %s4239_s21, %s4239_s21 }
  0x75   :  { %p4246_p12 = por %p4245_p11, %p4244_p10 }
  0x77   :  { %p4247_p13 = pnand %p4246_p12, %p4240_p9 }
  0x79   :  { %4250 = shalt.err (!%p4247_p13)
}
  0x7a   :  { %107 = dma.hbm_to_vmem [thread:$0]  %s5077_s9, 32, %s105_s8, [#allocation12]  }
  0x7b   :  { %s4318_s4 = smov [#allocation14]   ;;  %s4251_s16 = scalar_lea.hbm %s5080_s12, 16 }
  0x7c   :  { %s118_s27 = sshll.u32 %s4318_s4, 4  ;;  %p4252_p0 = scmp.ne.s32.totalorder %s5080_s12, %s4251_s16  ;;  %s119_s27 = int_to_ptr.vmem [resolvable:$true] %s118_s27 }
  0x7d   :  { %p4255_p1 = scmp.lt.u32.totalorder %s4251_s16, %s5080_s12 }
  0x7f   :  { %p4257_p2 = pnand %p4255_p1, %p4252_p0 }
  0x81   :  { %4260 = shalt.err (!%p4257_p2)
}
  0x82   :  { %s4261_s17 = scalar_lea.vmem %s119_s27, 16  ;;  %s4265_s9 = scalar_lea.vmem %s119_s27, 32 }
  0x83   :  { %p4262_p3 = scmp.ne.s32.totalorder %s119_s27, %s4261_s17  ;;  %p4266_p4 = scmp.lt.s32.totalorder %s119_s27, %s119_s27 }
  0x84   :  { %p4267_p5 = scmp.lt.s32.totalorder %s4265_s9, %s4261_s17 }
  0x86   :  { %p4268_p6 = por %p4267_p5, %p4266_p4 }
  0x88   :  { %p4269_p7 = pnand %p4268_p6, %p4262_p3 }
  0x8a   :  { %4272 = shalt.err (!%p4269_p7)
}
  0x8b   :  { %121 = dma.hbm_to_vmem [thread:$0]  %s5080_s12, 16, %s119_s27, [#allocation15]  }
  0x8c   :  { %4295 = dma.done.wait [#allocation3], 32  }
  0x8d   :  { %4296 = vsyncadd [#allocation3], 4294967264 }
  0x8e   :  { %4297 = dma.done.wait [#allocation6], 1024  }
  0x8f   :  { %4298 = vsyncadd [#allocation6], 4294966272 }
  0x90   :  { %4299 = dma.done.wait [#allocation9], 32  }
  0x91   :  { %4300 = vsyncadd [#allocation9], 4294967264 }
  0x92   :  { %4301 = dma.done.wait [#allocation12], 544  }
  0x93   :  { %4302 = vsyncadd [#allocation12], 4294966752 }
  0x94   :  { %4303 = dma.done.wait [#allocation15], 16  }
  0x95   :  { %4304 = vsyncadd [#allocation15], 4294967280  ;;  %v4319_v0 = vmov 0.0|0.0   ;;  %vm4320_vm0 = vmmov 0   ;;  %v4321_v1 = vmov 0.0   ;;  %v151_v2 = vld [vmem:[#allocation5] sm:$0xff] }
  0x96   :  { %3617 = vmatprep.subr.bf16.mxu0 %v4319_v0  ;;  %3352 = vmatprep.mubr.msk.f32.mxu0 %vm4320_vm0, %v4321_v1  ;;  %v152_v3 = vld [vmem:[#allocation5 + $0x8] sm:$0xff]  ;;  %v153_v4 = vld [vmem:[#allocation5 + $0x10] sm:$0xff]  ;;  %v154_v6 = vld [vmem:[#allocation5 + $0x18] sm:$0xff]  ;;  %vm162_vm1 = vcmask 261120   ;;  %vm531_vm2 = vcmask 130048   ;;  %vm608_vm3 = vcmask 523264  }
  0x97   :  { %3623 = vmatprep.subr.bf16.mxu1 %v4319_v0  ;;  %3363 = vmatprep.mubr.msk.f32.mxu1 %vm4320_vm0, %v4321_v1  ;;  %v3618_v5 = vpack.c.bf16 %v152_v3, %v151_v2  ;;  %v237_v7 = vld [vmem:[#allocation7] sm:$0xff]  ;;  %v238_v8 = vld [vmem:[#allocation7 + $0x8] sm:$0xff]  ;;  %v3621_v9 = vpack.c.bf16 %v154_v6, %v153_v4  ;;  %v150_v11 = vld [vmem:[#allocation2] sm:$0x3]  ;;  %s4326_s24 = smov 96   ;;  %s4327_s26 = smov 112  }
  0x98   :  { %v3624_v10 = vpack.c.bf16 %v238_v8, %v237_v7  ;;  %v239_v12 = vld [vmem:[#allocation7 + $0x10] sm:$0xff]  ;;  %v240_v13 = vld [vmem:[#allocation7 + $0x18] sm:$0xff]  ;;  %v407_v15 = vld [vmem:[%s5075_s7 + $0x8] sm:$0xff]  ;;  %vm3132_vm4 = vcmask 392192   ;;  %vm3135_vm5 = vcmask 654336   ;;  %vm3137_vm6 = vcmask 785408  }
  0x99   :  { %3619 = vmatpush3.bf16.msra.mxu0 %v3618_v5  ;;  %v3627_v14 = vpack.c.bf16 %v240_v13, %v239_v12  ;;  %v409_v16 = vld [vmem:[%s5075_s7 + $0x18] sm:$0xff]  ;;  %v322_v18 = vld [vmem:[%s5073_s5] sm:$0xff]  ;;  %v323_v19 = vld [vmem:[%s5073_s5 + $0x8] sm:$0xff]  ;;  %vm3139_vm7 = vcmask 916480  }
  0x9a   :  { %3620 = vmatprep.subr.bf16.mxu0 %v4319_v0  ;;  %3625 = vmatpush3.bf16.msra.mxu1 %v3624_v10  ;;  %v3635_v17 = vpack.c.bf16 %v409_v16, %v407_v15  ;;  %v3630_v20 = vpack.c.bf16 %v323_v19, %v322_v18  ;;  %v3161_v21 = vld [vmem:[%s5070_s2] ss:$0 sm:$0xff]  ;;  %v408_v23 = vld [vmem:[%s5075_s7 + $0x10] sm:$0xff]  ;;  %v411_v25 = vld [vmem:[%s5075_s7 + $0x28] sm:$0xff]  ;;  %v416_v19 = vlaneseq }
  0x9b   :  { %3626 = vmatprep.subr.bf16.mxu1 %v4319_v0  ;;  %v406_v22 = vld [vmem:[%s5075_s7] sm:$0xff]  ;;  %v413_v26 = vld [vmem:[%s5075_s7 + $0x38] sm:$0xff]  ;;  %v412_v33 = vld [vmem:[%s5075_s7 + $0x30] sm:$0xff] }
  0x9c   :  { %v3637_v29 = vpack.c.bf16 %v408_v23, %v406_v22  ;;  %v3639_v31 = vpack.c.bf16 %v413_v26, %v411_v25  ;;  %v410_v32 = vld [vmem:[%s5075_s7 + $0x20] sm:$0xff]  ;;  %v324_v35 = vld [vmem:[%s5073_s5 + $0x10] sm:$0xff]  ;;  %v325_v36 = vld [vmem:[%s5073_s5 + $0x18] sm:$0xff]  ;;  %s4324_s5 = smov 80  }
  0x9d   :  { %3622 = vmatpush3.bf16.msra.mxu0 %v3621_v9  ;;  %v3641_v34 = vpack.c.bf16 %v412_v33, %v410_v32  ;;  %v3633_v37 = vpack.c.bf16 %v325_v36, %v324_v35  ;;  %v502_v38 = vld [vmem:[%s5078_s10 + $0x8] sm:$0xff]  ;;  %v504_v39 = vld [vmem:[%s5078_s10 + $0x18] sm:$0xff]  ;;  %v3163_v47 = vld [vmem:[#allocation8] ss:$0 sm:$0xff] }
  0x9e   :  { %3629 = vmatprep.subr.bf16.mxu0 %v4319_v0  ;;  %3628 = vmatpush3.bf16.msra.mxu1 %v3627_v14  ;;  %v4574_v40 = vpack.c.bf16 %v504_v39, %v502_v38  ;;  %v498_v41 = vld [vmem:[#allocation11 + $0x8] sm:$0xff]  ;;  %v500_v42 = vld [vmem:[#allocation11 + $0x18] sm:$0xff]  ;;  %v497_v43 = vld [vmem:[#allocation11] sm:$0xff] }
  0x9f   :  { %3636 = vmatprep.subr.bf16.mxu1 %v3635_v17  ;;  %v4577_v44 = vpack.c.bf16 %v500_v42, %v498_v41  ;;  %v499_v45 = vld [vmem:[#allocation11 + $0x10] sm:$0xff]  ;;  %v501_v48 = vld [vmem:[%s5078_s10] sm:$0xff]  ;;  %v506_v51 = vld [vmem:[%s5078_s10 + $0x28] sm:$0xff] }
  0xa0   :  { %3353 = vmatmul.mubr.msk.f32.vlgmr.msra.gmra.mrb[0].mxu0 %vm162_vm1, %v150_v11  ;;  %v4579_v46 = vpack.c.bf16 %v499_v45, %v497_v43  ;;  %v503_v49 = vld [vmem:[%s5078_s10 + $0x10] sm:$0xff]  ;;  %v508_v52 = vld [vmem:[%s5078_s10 + $0x38] sm:$0xff]  ;;  %v505_v58 = vld [vmem:[%s5078_s10 + $0x20] sm:$0xff] }
  0xa1   :  { %3374 = vmatprep.mubr.msk.f32.mxu0 %vm4320_vm0, %v4321_v1  ;;  %3631 = vmatpush3.bf16.msra.mxu0 %v3630_v20  ;;  %v4596_v55 = vpack.c.bf16 %v503_v49, %v501_v48  ;;  %v4598_v57 = vpack.c.bf16 %v508_v52, %v506_v51  ;;  %v507_v59 = vld [vmem:[%s5078_s10 + $0x30] sm:$0xff]  ;;  %v510_v60 = vld [vmem:[%s5078_s10 + $0x48] sm:$0xff]  ;;  %v512_v61 = vld [vmem:[%s5078_s10 + $0x58] sm:$0xff]  ;;  %v417_v20 = vshrl.u32 %v416_v19, 7 }
  0xa2   :  { %3632 = vmatprep.subr.bf16.mxu0 %v4319_v0  ;;  %v4614_v62 = vpack.c.bf16 %v507_v59, %v505_v58  ;;  %v4618_v63 = vpack.c.bf16 %v512_v61, %v510_v60  ;;  %v509_v2 = vld [vmem:[%s5078_s10 + $0x40] sm:$0xff]  ;;  %v511_v3 = vld [vmem:[%s5078_s10 + $0x50] sm:$0xff]  ;;  %v514_v7 = vld [vmem:[%s5078_s10 + $0x68] sm:$0xff] }
  0xa3   :  { %v4627_v6 = vpack.c.bf16 %v511_v3, %v509_v2  ;;  %v516_v8 = vld [vmem:[%s5078_s10 + $0x78] sm:$0xff]  ;;  %v513_v10 = vld [vmem:[%s5078_s10 + $0x60] sm:$0xff]  ;;  %v515_v11 = vld [vmem:[%s5078_s10 + $0x70] sm:$0xff]  ;;  %v422_v23 = vsub.s32 1, %v417_v20  ;;  %s4322_s10 = smov 64  }
  0xa4   :  { %v4637_v9 = vpack.c.bf16 %v516_v8, %v514_v7  ;;  %v4645_v12 = vpack.c.bf16 %v515_v11, %v513_v10  ;;  %v3165_v13 = vld [vmem:[#allocation10] ss:$0 sm:$0xff]  ;;  %v414_v22 = vld [vmem:[#allocation13] sm:$0x3]  ;;  %v518_v42 = vld [vmem:[%s5079_s11 + $0x8] sm:$0xff] }
  0xa5   :  { %3634 = vmatpush3.bf16.msra.mxu0 %v3633_v37  ;;  %v423_v25 = vrot.slane %v414_v22, %v422_v23  ;;  %v517_v41 = vld [vmem:[%s5079_s11] sm:$0xff]  ;;  %v519_v43 = vld [vmem:[%s5079_s11 + $0x10] sm:$0xff]  ;;  %v527_v8 = vld [vmem:[%s5081_s13 + $0x8] sm:$0xff] }
  0xa6   :  { %3648 = vmatprep.subr.bf16.mxu0 %v4574_v40  ;;  %v4673_v45 = vpack.c.bf16 %v518_v42, %v517_v41  ;;  %v521_v49 = vld [vmem:[%s5079_s11 + $0x20] sm:$0xff]  ;;  %v523_v52 = vld [vmem:[%s5079_s11 + $0x30] sm:$0xff] }
  0xa7   :  { %v526_v7 = vld [vmem:[%s5081_s13] sm:$0xff] }
  0xa8   :  { %v4714_v10 = vpack.c.bf16 %v527_v8, %v526_v7 }
 0x173   :  { %v232_v24 = vpop.f32.mrb[0].mxu0 }
 0x174   :  { %v233_v27 = vadd.f32 %v3161_v21, %v232_v24  ;;  %v3354_v28 = vpop.f32.mrb[1].mxu0  ;;  %v418_v21 = vsub.s32 0, %v417_v20 }
 0x176   :  { %v236_v30 = vmax.f32 %v233_v27, 0.0  ;;  %v419_v24 = vrot.slane %v414_v22, %v418_v21  ;;  %v4748_v21 = vld [vmem:[%s5082_s14] ss:$0 sm:$0xff]  ;;  %s4323_s14 = smov 48  }
 0x178   :  { %3364 = vmatmul.mubr.msk.f32.vlgmr.msra.gmra.mrb[0].mxu1 %vm162_vm1, %v236_v30 }
 0x179   :  { %3638 = vmatpush1.bf16.msra.mxu1 %v3637_v29  ;;  %490 = vmatprep.mubr.f32.mxu1 %v4321_v1 }
 0x17a   :  { %3640 = vmatprep.subr.bf16.mxu1 %v3639_v31 }
 0x17d   :  { %3642 = vmatpush1.bf16.msra.mxu1 %v3641_v34 }
 0x17e   :  { %3644 = vmatprep.subr.bf16.mxu1 %v4577_v44 }
 0x180   :  { %3167 = vmatmul.mubr.msk.f32.vlgmr.msra.gmra.mrb[2].mxu1 %vm162_vm1, %v236_v30 }
 0x181   :  { %599 = vmatprep.mubr.f32.mxu1 %v4321_v1  ;;  %3646 = vmatpush1.bf16.msra.mxu1 %v4579_v46 }
 0x182   :  { %3663 = vmatprep.subr.bf16.mxu1 %v4319_v0 }
 0x24b   :  { %v317_v50 = vpop.f32.mrb[0].mxu1 }
 0x24c   :  { %v318_v53 = vadd.f32 %v3163_v47, %v317_v50  ;;  %v3365_v54 = vpop.f32.mrb[1].mxu1  ;;  %v520_v47 = vld [vmem:[%s5079_s11 + $0x18] sm:$0xff]  ;;  %v522_v50 = vld [vmem:[%s5079_s11 + $0x28] sm:$0xff] }
 0x24d   :  { %v4679_v48 = vpack.c.bf16 %v520_v47, %v519_v43  ;;  %v4689_v51 = vpack.c.bf16 %v522_v50, %v521_v49 }
 0x24e   :  { %v321_v56 = vmax.f32 %v318_v53, 0.0  ;;  %v524_v53 = vld [vmem:[%s5079_s11 + $0x38] sm:$0xff] }
 0x24f   :  { %v4699_v54 = vpack.c.bf16 %v524_v53, %v523_v52 }
 0x250   :  { %3375 = vmatmul.mubr.msk.f32.vlgmr.msra.gmra.mrb[2].mxu0 %vm162_vm1, %v321_v56 }
 0x251   :  { %3650 = vmatpush1.bf16.msra.mxu0 %v4596_v55  ;;  %676 = vmatprep.mubr.f32.mxu0 %v4321_v1 }
 0x252   :  { %3652 = vmatprep.subr.bf16.mxu0 %v4598_v57 }
 0x253   :  { %v492_v4 = vpop.f32.mrb[2].mxu1 }
 0x254   :  { %v494_v5 = vpop.f32.mrb[3].mxu1  ;;  %v4657_v26 = vadd.f32 %v492_v4, %v419_v24 }
 0x255   :  { %3654 = vmatpush1.bf16.msra.mxu0 %v4614_v62  ;;  %v4659_v27 = vadd.f32 %v494_v5, %v423_v25 }
 0x256   :  { %3656 = vmatprep.subr.bf16.mxu0 %v4618_v63 }
 0x259   :  { %3658 = vmatpush1.bf16.msra.mxu0 %v4627_v6 }
 0x25a   :  { %3660 = vmatprep.subr.bf16.mxu0 %v4637_v9 }
 0x25d   :  { %3662 = vmatpush1.bf16.msra.mxu0 %v4645_v12 }
 0x25e   :  { %3682 = vmatprep.subr.bf16.mxu0 %v4577_v44 }
 0x260   :  { %677 = vmatmul.mubr.f32.vlgmr.msra.gmra.mrb[4].mxu0 %v4321_v1 }
 0x261   :  { %3684 = vmatpush1.bf16.msra.mxu0 %v4579_v46  ;;  %935 = vmatprep.mubr.f32.mxu0 %v4321_v1 }
 0x262   :  { %3686 = vmatprep.subr.bf16.mxu0 %v4574_v40 }
 0x323   :  { %v402_v14 = vpop.f32.mrb[2].mxu0 }
 0x324   :  { %v403_v15 = vadd.f32 %v3165_v13, %v402_v14  ;;  %v3376_v16 = vpop.f32.mrb[3].mxu0  ;;  %v528_v13 = vld [vmem:[%s5081_s13 + $0x10] sm:$0xff]  ;;  %v529_v14 = vld [vmem:[%s5081_s13 + $0x18] sm:$0xff] }
 0x325   :  { %v4731_v16 = vld [vmem:[#allocation14] ss:$0 sm:$0xff] }
 0x326   :  { %3168 = vmatmul.mubr.msk.f32.vlgmr.msra.gmra.mrb[4].mxu1 %vm531_vm2, %v403_v15  ;;  %v4727_v15 = vpack.c.bf16 %v529_v14, %v528_v13 }
 0x327   :  { %3393 = vmatprep.mubr.msk.f32.mxu1 %vm4320_vm0, %v4321_v1  ;;  %3665 = vmatpush3.bf16.msra.mxu1 %v4673_v45 }
 0x328   :  { %3666 = vmatprep.subr.bf16.mxu1 %v4319_v0 }
 0x32b   :  { %3668 = vmatpush3.bf16.msra.mxu1 %v4679_v48 }
 0x32c   :  { %3669 = vmatprep.subr.bf16.mxu1 %v4319_v0 }
 0x32f   :  { %3671 = vmatpush3.bf16.msra.mxu1 %v4689_v51 }
 0x330   :  { %3672 = vmatprep.subr.bf16.mxu1 %v4319_v0 }
 0x333   :  { %v678_v17 = vpop.f32.mrb[4].mxu0  ;;  %3674 = vmatpush3.bf16.msra.mxu1 %v4699_v54 }
 0x334   :  { %v680_v18 = vpop.f32.mrb[5].mxu0  ;;  %3675 = vmatprep.subr.bf16.mxu1 %v4319_v0 }
 0x3f9   :  { %v601_v28 = vpop.f32.mrb[4].mxu1 }
 0x3fa   :  { %v606_v29 = vadd.f32 %v601_v28, %v4657_v26  ;;  %v603_v30 = vpop.f32.mrb[5].mxu1 }
 0x3fb   :  { %v607_v31 = vadd.f32 %v603_v30, %v4659_v27 }
 0x3fc   :  { %v683_v32 = vadd.f32 %v678_v17, %v606_v29 }
 0x3fd   :  { %v684_v33 = vadd.f32 %v680_v18, %v607_v31 }
 0x3fe   :  { %v3169_v34 = vmul.f32 -1.442695, %v683_v32 }
 0x3ff   :  { %v3170_v56 = vmul.f32 -1.442695, %v684_v33 }
 0x400   :  { %4001 = vpow2.f32 %v3169_v34 }
 0x401   :  { %4003 = vtanh.f32 %v684_v33 }
 0x40a   :  { %v4002_v35 = vpop.eup %4001 }
 0x40b   :  { %v691_v36 = vadd.f32 1.0, %v4002_v35  ;;  %v4004_v37 = vpop.eup %4003 }
 0x40d   :  { %4005 = vrcp.f32 %v691_v36 }
 0x40e   :  { %4007 = vpow2.f32 %v3170_v56 }
 0x417   :  { %v4006_v38 = vpop.eup %4005 }
 0x418   :  { %v699_v39 = vmul.f32 %v4006_v38, %v4004_v37  ;;  %v4008_v58 = vpop.eup %4007  ;;  %v698_v60 = vmul.f32 0.0, %v4006_v38 }
 0x419   :  { %v692_v59 = vadd.f32 1.0, %v4008_v58 }
 0x41a   :  { %701 = vrot.lane.b32.xlu0 %v699_v39, %s4322_s10 }
 0x41b   :  { %4009 = vrcp.f32 %v692_v59 }
 0x425   :  { %v4010_v3 = vpop.eup %4009 }
 0x48c   :  { %v702_v61 = vpop.permute.xlu0 %701 }
 0x48d   :  { %v4704_v2 = vadd.f32 %v702_v61, %v698_v60 }
 0x48f   :  { %4011 = vtanh.f32 %v4704_v2 }
 0x499   :  { %v4012_v4 = vpop.eup %4011 }
 0x49a   :  { %v706_v5 = vmul.f32 %v4012_v4, %v4010_v3 }
 0x49c   :  { %714 = vrot.lane.b32.xlu0 %v706_v5, %s4322_s10 }
 0x50e   :  { %v715_v11 = vpop.permute.xlu0 %714 }
 0x50f   :  { %3394 = vmatmul.mubr.msk.f32.vlgmr.msra.gmra.mrb[6].mxu1 %vm608_vm3, %v715_v11 }
 0x510   :  { %3677 = vmatpush3.bf16.msra.mxu1 %v4714_v10  ;;  %3404 = vmatprep.mubr.msk.f32.mxu1 %vm4320_vm0, %v4321_v1 }
 0x511   :  { %3678 = vmatprep.subr.bf16.mxu1 %v4319_v0 }
 0x514   :  { %3680 = vmatpush3.bf16.msra.mxu1 %v4727_v15 }
 0x515   :  { %3701 = vmatprep.subr.bf16.mxu1 %v4319_v0 }
 0x5e2   :  { %v784_v17 = vpop.f32.mrb[6].mxu1 }
 0x5e3   :  { %v785_v18 = vadd.f32 %v4731_v16, %v784_v17  ;;  %v3395_v19 = vpop.f32.mrb[7].mxu1 }
 0x5e5   :  { %v788_v20 = vmax.f32 %v785_v18, 0.0 }
 0x5e7   :  { %3405 = vmatmul.mubr.msk.f32.vlgmr.msra.gmra.mrb[8].mxu1 %vm162_vm1, %v788_v20 }
 0x5e8   :  { %3703 = vmatpush3.bf16.msra.mxu1 %v4673_v45  ;;  %3423 = vmatprep.mubr.msk.f32.mxu1 %vm4320_vm0, %v4321_v1 }
 0x5e9   :  { %3704 = vmatprep.subr.bf16.mxu1 %v4319_v0 }
 0x5ec   :  { %3706 = vmatpush3.bf16.msra.mxu1 %v4679_v48 }
 0x5ed   :  { %3707 = vmatprep.subr.bf16.mxu1 %v4319_v0 }
 0x5f0   :  { %3709 = vmatpush3.bf16.msra.mxu1 %v4689_v51 }
 0x5f1   :  { %3710 = vmatprep.subr.bf16.mxu1 %v4319_v0 }
 0x5f4   :  { %3712 = vmatpush3.bf16.msra.mxu1 %v4699_v54 }
 0x5f5   :  { %3720 = vmatprep.subr.bf16.mxu1 %v4577_v44 }
 0x6ba   :  { %v864_v22 = vpop.f32.mrb[8].mxu1 }
 0x6bb   :  { %v4751_v23 = vadd.f32 %v4748_v21, %v864_v22  ;;  %v3406_v24 = vpop.f32.mrb[9].mxu1 }
 0x6bd   :  { %3175 = vmatmul.mubr.msk.f32.vlgmr.msra.gmra.mrb[6].mxu0 %vm531_vm2, %v4751_v23 }
 0x6be   :  { %3688 = vmatpush1.bf16.msra.mxu0 %v4596_v55  ;;  %1008 = vmatprep.mubr.f32.mxu0 %v4321_v1 }
 0x6bf   :  { %3690 = vmatprep.subr.bf16.mxu0 %v4598_v57 }
 0x6c2   :  { %3692 = vmatpush1.bf16.msra.mxu0 %v4614_v62 }
 0x6c3   :  { %3694 = vmatprep.subr.bf16.mxu0 %v4618_v63 }
 0x6c6   :  { %3696 = vmatpush1.bf16.msra.mxu0 %v4627_v6 }
 0x6c7   :  { %3698 = vmatprep.subr.bf16.mxu0 %v4637_v9 }
 0x6ca   :  { %3700 = vmatpush1.bf16.msra.mxu0 %v4645_v12 }
 0x6cb   :  { %3713 = vmatprep.subr.bf16.mxu0 %v4319_v0 }
 0x6cd   :  { %3176 = vmatmul.mubr.msk.f32.vlgmr.msra.gmra.mrb[6].mxu0 %vm608_vm3, %v715_v11 }
 0x6ce   :  { %3715 = vmatpush3.bf16.msra.mxu0 %v4714_v10  ;;  %3434 = vmatprep.mubr.msk.f32.mxu0 %vm4320_vm0, %v4321_v1 }
 0x6cf   :  { %3716 = vmatprep.subr.bf16.mxu0 %v4319_v0 }
 0x6d2   :  { %3718 = vmatpush3.bf16.msra.mxu0 %v4727_v15 }
 0x6d3   :  { %3739 = vmatprep.subr.bf16.mxu0 %v4319_v0 }
 0x7a0   :  { %v1010_v25 = vpop.f32.mrb[6].mxu0 }
 0x7a1   :  { %v3951_v28 = vadd.f32 %v1010_v25, %v4657_v26  ;;  %v1012_v29 = vpop.f32.mrb[7].mxu0 }
 0x7a2   :  { %v3952_v31 = vadd.f32 %v1012_v29, %v4659_v27 }
 0x7a3   :  { %v3177_v30 = vmul.f32 -1.442695, %v3951_v28 }
 0x7a4   :  { %v3178_v37 = vmul.f32 -1.442695, %v3952_v31 }
 0x7a5   :  { %4013 = vpow2.f32 %v3177_v30 }
 0x7a6   :  { %4015 = vtanh.f32 %v3952_v31 }
 0x7af   :  { %v4014_v32 = vpop.eup %4013 }
 0x7b0   :  { %v1023_v33 = vadd.f32 1.0, %v4014_v32  ;;  %v4016_v34 = vpop.eup %4015 }
 0x7b2   :  { %4017 = vrcp.f32 %v1023_v33 }
 0x7b3   :  { %4019 = vpow2.f32 %v3178_v37 }
 0x7bc   :  { %v4018_v35 = vpop.eup %4017 }
 0x7bd   :  { %v1031_v36 = vmul.f32 %v4018_v35, %v4016_v34  ;;  %v4020_v38 = vpop.eup %4019  ;;  %v1030_v41 = vmul.f32 %v4018_v35, %v4704_v2 }
 0x7be   :  { %v1024_v39 = vadd.f32 1.0, %v4020_v38 }
 0x7bf   :  { %1033 = vrot.lane.b32.xlu1 %v1031_v36, %s4322_s10 }
 0x7c0   :  { %4021 = vrcp.f32 %v1024_v39 }
 0x7ca   :  { %v4022_v47 = vpop.eup %4021 }
 0x831   :  { %v1034_v42 = vpop.permute.xlu1 %1033 }
 0x832   :  { %v4775_v43 = vadd.f32 %v1034_v42, %v1030_v41 }
 0x834   :  { %4023 = vtanh.f32 %v4775_v43 }
 0x83e   :  { %v4024_v49 = vpop.eup %4023 }
 0x83f   :  { %v1038_v50 = vmul.f32 %v4024_v49, %v4022_v47 }
 0x841   :  { %1040 = vrot.lane.b32.xlu1 %v1038_v50, %s4322_s10 }
 0x8b3   :  { %v1041_v52 = vpop.permute.xlu1 %1040 }
 0x8b4   :  { %3424 = vmatmul.mubr.msk.f32.vlgmr.msra.gmra.mrb[10].mxu1 %vm608_vm3, %v1041_v52 }
 0x8b5   :  { %3722 = vmatpush1.bf16.msra.mxu1 %v4579_v46  ;;  %1255 = vmatprep.mubr.f32.mxu1 %v4321_v1 }
 0x8b6   :  { %3724 = vmatprep.subr.bf16.mxu1 %v4574_v40 }
 0x987   :  { %v1110_v53 = vpop.f32.mrb[10].mxu1 }
 0x988   :  { %v1111_v56 = vadd.f32 %v4731_v16, %v1110_v53  ;;  %v3425_v58 = vpop.f32.mrb[11].mxu1 }
 0x98a   :  { %v1114_v59 = vmax.f32 %v1111_v56, 0.0 }
 0x98c   :  { %3435 = vmatmul.mubr.msk.f32.vlgmr.msra.gmra.mrb[8].mxu0 %vm162_vm1, %v1114_v59 }
 0x98d   :  { %3741 = vmatpush3.bf16.msra.mxu0 %v4673_v45  ;;  %3453 = vmatprep.mubr.msk.f32.mxu0 %vm4320_vm0, %v4321_v1 }
 0x98e   :  { %3742 = vmatprep.subr.bf16.mxu0 %v4319_v0 }
 0x991   :  { %3744 = vmatpush3.bf16.msra.mxu0 %v4679_v48 }
 0x992   :  { %3745 = vmatprep.subr.bf16.mxu0 %v4319_v0 }
 0x995   :  { %3747 = vmatpush3.bf16.msra.mxu0 %v4689_v51 }
 0x996   :  { %3748 = vmatprep.subr.bf16.mxu0 %v4319_v0 }
 0x999   :  { %3750 = vmatpush3.bf16.msra.mxu0 %v4699_v54 }
 0x99a   :  { %3758 = vmatprep.subr.bf16.mxu0 %v4577_v44 }
 0xa5f   :  { %v1184_v60 = vpop.f32.mrb[8].mxu0 }
 0xa60   :  { %v4796_v61 = vadd.f32 %v4748_v21, %v1184_v60  ;;  %v3436_v2 = vpop.f32.mrb[9].mxu0 }
 0xa62   :  { %3181 = vmatmul.mubr.msk.f32.vlgmr.msra.gmra.mrb[12].mxu1 %vm531_vm2, %v4796_v61 }
 0xa63   :  { %3726 = vmatpush1.bf16.msra.mxu1 %v4596_v55  ;;  %1328 = vmatprep.mubr.f32.mxu1 %v4321_v1 }
 0xa64   :  { %3728 = vmatprep.subr.bf16.mxu1 %v4598_v57 }
 0xa67   :  { %3730 = vmatpush1.bf16.msra.mxu1 %v4614_v62 }
 0xa68   :  { %3732 = vmatprep.subr.bf16.mxu1 %v4618_v63 }
 0xa6b   :  { %3734 = vmatpush1.bf16.msra.mxu1 %v4627_v6 }
 0xa6c   :  { %3736 = vmatprep.subr.bf16.mxu1 %v4637_v9 }
 0xa6f   :  { %3738 = vmatpush1.bf16.msra.mxu1 %v4645_v12 }
 0xa70   :  { %3751 = vmatprep.subr.bf16.mxu1 %v4319_v0 }
 0xa72   :  { %3182 = vmatmul.mubr.msk.f32.vlgmr.msra.gmra.mrb[12].mxu1 %vm608_vm3, %v1041_v52 }
 0xa73   :  { %3753 = vmatpush3.bf16.msra.mxu1 %v4714_v10  ;;  %3464 = vmatprep.mubr.msk.f32.mxu1 %vm4320_vm0, %v4321_v1 }
 0xa74   :  { %3754 = vmatprep.subr.bf16.mxu1 %v4319_v0 }
 0xa77   :  { %3756 = vmatpush3.bf16.msra.mxu1 %v4727_v15 }
 0xa78   :  { %3777 = vmatprep.subr.bf16.mxu1 %v4319_v0 }
 0xb45   :  { %v1330_v3 = vpop.f32.mrb[12].mxu1 }
 0xb46   :  { %v3953_v4 = vadd.f32 %v1330_v3, %v4657_v26  ;;  %v1332_v5 = vpop.f32.mrb[13].mxu1 }
 0xb47   :  { %v3954_v8 = vadd.f32 %v1332_v5, %v4659_v27 }
 0xb48   :  { %v3183_v7 = vmul.f32 -1.442695, %v3953_v4 }
 0xb49   :  { %v3184_v19 = vmul.f32 -1.442695, %v3954_v8 }
 0xb4a   :  { %4025 = vpow2.f32 %v3183_v7 }
 0xb4b   :  { %4027 = vtanh.f32 %v3954_v8 }
 0xb54   :  { %v4026_v11 = vpop.eup %4025 }
 0xb55   :  { %v1343_v13 = vadd.f32 1.0, %v4026_v11  ;;  %v4028_v14 = vpop.eup %4027 }
 0xb57   :  { %4029 = vrcp.f32 %v1343_v13 }
 0xb58   :  { %4031 = vpow2.f32 %v3184_v19 }
 0xb61   :  { %v4030_v17 = vpop.eup %4029 }
 0xb62   :  { %v1351_v18 = vmul.f32 %v4030_v17, %v4028_v14  ;;  %v4032_v20 = vpop.eup %4031  ;;  %v1350_v24 = vmul.f32 %v4030_v17, %v4775_v43 }
 0xb63   :  { %v1344_v22 = vadd.f32 1.0, %v4032_v20 }
 0xb64   :  { %1353 = vrot.lane.b32.xlu0 %v1351_v18, %s4322_s10 }
 0xb65   :  { %4033 = vrcp.f32 %v1344_v22 }
 0xb6f   :  { %v4034_v29 = vpop.eup %4033 }
 0xbd6   :  { %v1354_v25 = vpop.permute.xlu0 %1353 }
 0xbd7   :  { %v4820_v28 = vadd.f32 %v1354_v25, %v1350_v24 }
 0xbd9   :  { %4035 = vtanh.f32 %v4820_v28 }
 0xbe3   :  { %v4036_v30 = vpop.eup %4035 }
 0xbe4   :  { %v1358_v31 = vmul.f32 %v4036_v30, %v4034_v29 }
 0xbe6   :  { %1360 = vrot.lane.b32.xlu1 %v1358_v31, %s4322_s10 }
 0xc58   :  { %v1361_v32 = vpop.permute.xlu1 %1360 }
 0xc59   :  { %3454 = vmatmul.mubr.msk.f32.vlgmr.msra.gmra.mrb[10].mxu0 %vm608_vm3, %v1361_v32 }
 0xc5a   :  { %3760 = vmatpush1.bf16.msra.mxu0 %v4579_v46  ;;  %1575 = vmatprep.mubr.f32.mxu0 %v4321_v1 }
 0xc5b   :  { %3762 = vmatprep.subr.bf16.mxu0 %v4574_v40 }
 0xd2c   :  { %v1430_v33 = vpop.f32.mrb[10].mxu0 }
 0xd2d   :  { %v1431_v34 = vadd.f32 %v4731_v16, %v1430_v33  ;;  %v3455_v35 = vpop.f32.mrb[11].mxu0 }
 0xd2f   :  { %v1434_v36 = vmax.f32 %v1431_v34, 0.0 }
 0xd31   :  { %3465 = vmatmul.mubr.msk.f32.vlgmr.msra.gmra.mrb[14].mxu1 %vm162_vm1, %v1434_v36 }
 0xd32   :  { %3779 = vmatpush3.bf16.msra.mxu1 %v4673_v45  ;;  %3483 = vmatprep.mubr.msk.f32.mxu1 %vm4320_vm0, %v4321_v1 }
 0xd33   :  { %3780 = vmatprep.subr.bf16.mxu1 %v4319_v0 }
 0xd36   :  { %3782 = vmatpush3.bf16.msra.mxu1 %v4679_v48 }
 0xd37   :  { %3783 = vmatprep.subr.bf16.mxu1 %v4319_v0 }
 0xd3a   :  { %3785 = vmatpush3.bf16.msra.mxu1 %v4689_v51 }
 0xd3b   :  { %3786 = vmatprep.subr.bf16.mxu1 %v4319_v0 }
 0xd3e   :  { %3788 = vmatpush3.bf16.msra.mxu1 %v4699_v54 }
 0xd3f   :  { %3796 = vmatprep.subr.bf16.mxu1 %v4577_v44 }
 0xe04   :  { %v1504_v37 = vpop.f32.mrb[14].mxu1 }
 0xe05   :  { %v4841_v38 = vadd.f32 %v4748_v21, %v1504_v37  ;;  %v3466_v39 = vpop.f32.mrb[15].mxu1 }
 0xe07   :  { %3187 = vmatmul.mubr.msk.f32.vlgmr.msra.gmra.mrb[12].mxu0 %vm531_vm2, %v4841_v38 }
 0xe08   :  { %3764 = vmatpush1.bf16.msra.mxu0 %v4596_v55  ;;  %1648 = vmatprep.mubr.f32.mxu0 %v4321_v1 }
 0xe09   :  { %3766 = vmatprep.subr.bf16.mxu0 %v4598_v57 }
 0xe0c   :  { %3768 = vmatpush1.bf16.msra.mxu0 %v4614_v62 }
 0xe0d   :  { %3770 = vmatprep.subr.bf16.mxu0 %v4618_v63 }
 0xe10   :  { %3772 = vmatpush1.bf16.msra.mxu0 %v4627_v6 }
 0xe11   :  { %3774 = vmatprep.subr.bf16.mxu0 %v4637_v9 }
 0xe14   :  { %3776 = vmatpush1.bf16.msra.mxu0 %v4645_v12 }
 0xe15   :  { %3789 = vmatprep.subr.bf16.mxu0 %v4319_v0 }
 0xe17   :  { %3188 = vmatmul.mubr.msk.f32.vlgmr.msra.gmra.mrb[12].mxu0 %vm608_vm3, %v1361_v32 }
 0xe18   :  { %3791 = vmatpush3.bf16.msra.mxu0 %v4714_v10  ;;  %3494 = vmatprep.mubr.msk.f32.mxu0 %vm4320_vm0, %v4321_v1 }
 0xe19   :  { %3792 = vmatprep.subr.bf16.mxu0 %v4319_v0 }
 0xe1c   :  { %3794 = vmatpush3.bf16.msra.mxu0 %v4727_v15 }
 0xe1d   :  { %3815 = vmatprep.subr.bf16.mxu0 %v4319_v0 }
 0xeea   :  { %v1650_v41 = vpop.f32.mrb[12].mxu0 }
 0xeeb   :  { %v3955_v42 = vadd.f32 %v1650_v41, %v4657_v26  ;;  %v1652_v43 = vpop.f32.mrb[13].mxu0 }
 0xeec   :  { %v3956_v49 = vadd.f32 %v1652_v43, %v4659_v27 }
 0xeed   :  { %v3189_v47 = vmul.f32 -1.442695, %v3955_v42 }
 0xeee   :  { %v3190_v59 = vmul.f32 -1.442695, %v3956_v49 }
 0xeef   :  { %4037 = vpow2.f32 %v3189_v47 }
 0xef0   :  { %4039 = vtanh.f32 %v3956_v49 }
 0xef9   :  { %v4038_v50 = vpop.eup %4037 }
 0xefa   :  { %v1663_v52 = vadd.f32 1.0, %v4038_v50  ;;  %v4040_v53 = vpop.eup %4039 }
 0xefc   :  { %4041 = vrcp.f32 %v1663_v52 }
 0xefd   :  { %4043 = vpow2.f32 %v3190_v59 }
 0xf06   :  { %v4042_v56 = vpop.eup %4041 }
 0xf07   :  { %v1671_v58 = vmul.f32 %v4042_v56, %v4040_v53  ;;  %v4044_v60 = vpop.eup %4043  ;;  %v1670_v3 = vmul.f32 %v4042_v56, %v4820_v28 }
 0xf08   :  { %v1664_v2 = vadd.f32 1.0, %v4044_v60 }
 0xf09   :  { %1673 = vrot.lane.b32.xlu0 %v1671_v58, %s4322_s10 }
 0xf0a   :  { %4045 = vrcp.f32 %v1664_v2 }
 0xf14   :  { %v4046_v7 = vpop.eup %4045 }
 0xf7b   :  { %v1674_v4 = vpop.permute.xlu0 %1673 }
 0xf7c   :  { %v4865_v5 = vadd.f32 %v1674_v4, %v1670_v3 }
 0xf7e   :  { %4047 = vtanh.f32 %v4865_v5 }
 0xf88   :  { %v4048_v8 = vpop.eup %4047 }
 0xf89   :  { %v1678_v11 = vmul.f32 %v4048_v8, %v4046_v7 }
 0xf8b   :  { %1680 = vrot.lane.b32.xlu1 %v1678_v11, %s4322_s10 }
 0xffd   :  { %v1681_v13 = vpop.permute.xlu1 %1680 }
 0xffe   :  { %3484 = vmatmul.mubr.msk.f32.vlgmr.msra.gmra.mrb[16].mxu1 %vm608_vm3, %v1681_v13 }
 0xfff   :  { %3798 = vmatpush1.bf16.msra.mxu1 %v4579_v46  ;;  %1895 = vmatprep.mubr.f32.mxu1 %v4321_v1 }
0x1000   :  { %3800 = vmatprep.subr.bf16.mxu1 %v4574_v40 }
0x10d1   :  { %v1750_v14 = vpop.f32.mrb[16].mxu1 }
0x10d2   :  { %v1751_v17 = vadd.f32 %v4731_v16, %v1750_v14  ;;  %v3485_v18 = vpop.f32.mrb[17].mxu1 }
0x10d4   :  { %v1754_v19 = vmax.f32 %v1751_v17, 0.0 }
0x10d6   :  { %3495 = vmatmul.mubr.msk.f32.vlgmr.msra.gmra.mrb[14].mxu0 %vm162_vm1, %v1754_v19 }
0x10d7   :  { %3817 = vmatpush3.bf16.msra.mxu0 %v4673_v45  ;;  %3513 = vmatprep.mubr.msk.f32.mxu0 %vm4320_vm0, %v4321_v1 }
0x10d8   :  { %3818 = vmatprep.subr.bf16.mxu0 %v4319_v0 }
0x10db   :  { %3820 = vmatpush3.bf16.msra.mxu0 %v4679_v48 }
0x10dc   :  { %3821 = vmatprep.subr.bf16.mxu0 %v4319_v0 }
0x10df   :  { %3823 = vmatpush3.bf16.msra.mxu0 %v4689_v51 }
0x10e0   :  { %3824 = vmatprep.subr.bf16.mxu0 %v4319_v0 }
0x10e3   :  { %3826 = vmatpush3.bf16.msra.mxu0 %v4699_v54 }
0x10e4   :  { %3834 = vmatprep.subr.bf16.mxu0 %v4577_v44 }
0x11a9   :  { %v1824_v20 = vpop.f32.mrb[14].mxu0 }
0x11aa   :  { %v4886_v22 = vadd.f32 %v4748_v21, %v1824_v20  ;;  %v3496_v24 = vpop.f32.mrb[15].mxu0 }
0x11ac   :  { %3193 = vmatmul.mubr.msk.f32.vlgmr.msra.gmra.mrb[18].mxu1 %vm531_vm2, %v4886_v22 }
0x11ad   :  { %3802 = vmatpush1.bf16.msra.mxu1 %v4596_v55  ;;  %1968 = vmatprep.mubr.f32.mxu1 %v4321_v1 }
0x11ae   :  { %3804 = vmatprep.subr.bf16.mxu1 %v4598_v57 }
0x11b1   :  { %3806 = vmatpush1.bf16.msra.mxu1 %v4614_v62 }
0x11b2   :  { %3808 = vmatprep.subr.bf16.mxu1 %v4618_v63 }
0x11b5   :  { %3810 = vmatpush1.bf16.msra.mxu1 %v4627_v6 }
0x11b6   :  { %3812 = vmatprep.subr.bf16.mxu1 %v4637_v9 }
0x11b9   :  { %3814 = vmatpush1.bf16.msra.mxu1 %v4645_v12 }
0x11ba   :  { %3827 = vmatprep.subr.bf16.mxu1 %v4319_v0 }
0x11bc   :  { %3194 = vmatmul.mubr.msk.f32.vlgmr.msra.gmra.mrb[18].mxu1 %vm608_vm3, %v1681_v13 }
0x11bd   :  { %3829 = vmatpush3.bf16.msra.mxu1 %v4714_v10  ;;  %3524 = vmatprep.mubr.msk.f32.mxu1 %vm4320_vm0, %v4321_v1 }
0x11be   :  { %3830 = vmatprep.subr.bf16.mxu1 %v4319_v0 }
0x11c1   :  { %3832 = vmatpush3.bf16.msra.mxu1 %v4727_v15 }
0x11c2   :  { %3853 = vmatprep.subr.bf16.mxu1 %v4319_v0 }
0x128f   :  { %v1970_v25 = vpop.f32.mrb[18].mxu1 }
0x1290   :  { %v3957_v28 = vadd.f32 %v1970_v25, %v4657_v26  ;;  %v1972_v29 = vpop.f32.mrb[19].mxu1 }
0x1291   :  { %v3958_v31 = vadd.f32 %v1972_v29, %v4659_v27 }
0x1292   :  { %v3195_v30 = vmul.f32 -1.442695, %v3957_v28 }
0x1293   :  { %v3196_v37 = vmul.f32 -1.442695, %v3958_v31 }
0x1294   :  { %4049 = vpow2.f32 %v3195_v30 }
0x1295   :  { %4051 = vtanh.f32 %v3958_v31 }
0x129e   :  { %v4050_v32 = vpop.eup %4049 }
0x129f   :  { %v1983_v33 = vadd.f32 1.0, %v4050_v32  ;;  %v4052_v34 = vpop.eup %4051 }
0x12a1   :  { %4053 = vrcp.f32 %v1983_v33 }
0x12a2   :  { %4055 = vpow2.f32 %v3196_v37 }
0x12ab   :  { %v4054_v35 = vpop.eup %4053 }
0x12ac   :  { %v1991_v36 = vmul.f32 %v4054_v35, %v4052_v34  ;;  %v4056_v39 = vpop.eup %4055  ;;  %v1990_v42 = vmul.f32 %v4054_v35, %v4865_v5 }
0x12ad   :  { %v1984_v41 = vadd.f32 1.0, %v4056_v39 }
0x12ae   :  { %1993 = vrot.lane.b32.xlu0 %v1991_v36, %s4322_s10 }
0x12af   :  { %4057 = vrcp.f32 %v1984_v41 }
0x12b9   :  { %v4058_v49 = vpop.eup %4057 }
0x1320   :  { %v1994_v43 = vpop.permute.xlu0 %1993 }
0x1321   :  { %v4910_v47 = vadd.f32 %v1994_v43, %v1990_v42 }
0x1323   :  { %4059 = vtanh.f32 %v4910_v47 }
0x132d   :  { %v4060_v50 = vpop.eup %4059 }
0x132e   :  { %v1998_v52 = vmul.f32 %v4060_v50, %v4058_v49 }
0x1330   :  { %2000 = vrot.lane.b32.xlu1 %v1998_v52, %s4322_s10 }
0x13a2   :  { %v2001_v53 = vpop.permute.xlu1 %2000 }
0x13a3   :  { %3514 = vmatmul.mubr.msk.f32.vlgmr.msra.gmra.mrb[16].mxu0 %vm608_vm3, %v2001_v53 }
0x13a4   :  { %3836 = vmatpush1.bf16.msra.mxu0 %v4579_v46  ;;  %2215 = vmatprep.mubr.f32.mxu0 %v4321_v1 }
0x13a5   :  { %3838 = vmatprep.subr.bf16.mxu0 %v4574_v40 }
0x1476   :  { %v2070_v56 = vpop.f32.mrb[16].mxu0 }
0x1477   :  { %v2071_v58 = vadd.f32 %v4731_v16, %v2070_v56  ;;  %v3515_v59 = vpop.f32.mrb[17].mxu0 }
0x1479   :  { %v2074_v60 = vmax.f32 %v2071_v58, 0.0 }
0x147b   :  { %3525 = vmatmul.mubr.msk.f32.vlgmr.msra.gmra.mrb[20].mxu1 %vm162_vm1, %v2074_v60 }
0x147c   :  { %3855 = vmatpush3.bf16.msra.mxu1 %v4673_v45  ;;  %3543 = vmatprep.mubr.msk.f32.mxu1 %vm4320_vm0, %v4321_v1 }
0x147d   :  { %3856 = vmatprep.subr.bf16.mxu1 %v4319_v0 }
0x1480   :  { %3858 = vmatpush3.bf16.msra.mxu1 %v4679_v48 }
0x1481   :  { %3859 = vmatprep.subr.bf16.mxu1 %v4319_v0 }
0x1484   :  { %3861 = vmatpush3.bf16.msra.mxu1 %v4689_v51 }
0x1485   :  { %3862 = vmatprep.subr.bf16.mxu1 %v4319_v0 }
0x1488   :  { %3864 = vmatpush3.bf16.msra.mxu1 %v4699_v54 }
0x1489   :  { %3872 = vmatprep.subr.bf16.mxu1 %v4577_v44 }
0x154e   :  { %v2144_v2 = vpop.f32.mrb[20].mxu1 }
0x154f   :  { %v4931_v3 = vadd.f32 %v4748_v21, %v2144_v2  ;;  %v3526_v4 = vpop.f32.mrb[21].mxu1 }
0x1551   :  { %3199 = vmatmul.mubr.msk.f32.vlgmr.msra.gmra.mrb[18].mxu0 %vm531_vm2, %v4931_v3 }
0x1552   :  { %3840 = vmatpush1.bf16.msra.mxu0 %v4596_v55  ;;  %2288 = vmatprep.mubr.f32.mxu0 %v4321_v1 }
0x1553   :  { %3842 = vmatprep.subr.bf16.mxu0 %v4598_v57 }
0x1556   :  { %3844 = vmatpush1.bf16.msra.mxu0 %v4614_v62 }
0x1557   :  { %3846 = vmatprep.subr.bf16.mxu0 %v4618_v63 }
0x155a   :  { %3848 = vmatpush1.bf16.msra.mxu0 %v4627_v6 }
0x155b   :  { %3850 = vmatprep.subr.bf16.mxu0 %v4637_v9 }
0x155e   :  { %3852 = vmatpush1.bf16.msra.mxu0 %v4645_v12 }
0x155f   :  { %3865 = vmatprep.subr.bf16.mxu0 %v4319_v0 }
0x1561   :  { %3200 = vmatmul.mubr.msk.f32.vlgmr.msra.gmra.mrb[18].mxu0 %vm608_vm3, %v2001_v53 }
0x1562   :  { %3867 = vmatpush3.bf16.msra.mxu0 %v4714_v10  ;;  %3554 = vmatprep.mubr.msk.f32.mxu0 %vm4320_vm0, %v4321_v1 }
0x1563   :  { %3868 = vmatprep.subr.bf16.mxu0 %v4319_v0 }
0x1566   :  { %3870 = vmatpush3.bf16.msra.mxu0 %v4727_v15 }
0x1567   :  { %3891 = vmatprep.subr.bf16.mxu0 %v4319_v0 }
0x1634   :  { %v2290_v5 = vpop.f32.mrb[18].mxu0 }
0x1635   :  { %v3959_v7 = vadd.f32 %v2290_v5, %v4657_v26  ;;  %v2292_v8 = vpop.f32.mrb[19].mxu0 }
0x1636   :  { %v3960_v13 = vadd.f32 %v2292_v8, %v4659_v27 }
0x1637   :  { %v3201_v11 = vmul.f32 -1.442695, %v3959_v7 }
0x1638   :  { %v3202_v24 = vmul.f32 -1.442695, %v3960_v13 }
0x1639   :  { %4061 = vpow2.f32 %v3201_v11 }
0x163a   :  { %4063 = vtanh.f32 %v3960_v13 }
0x1643   :  { %v4062_v14 = vpop.eup %4061 }
0x1644   :  { %v2303_v17 = vadd.f32 1.0, %v4062_v14  ;;  %v4064_v18 = vpop.eup %4063 }
0x1646   :  { %4065 = vrcp.f32 %v2303_v17 }
0x1647   :  { %4067 = vpow2.f32 %v3202_v24 }
0x1650   :  { %v4066_v19 = vpop.eup %4065 }
0x1651   :  { %v2311_v20 = vmul.f32 %v4066_v19, %v4064_v18  ;;  %v4068_v25 = vpop.eup %4067  ;;  %v2310_v29 = vmul.f32 %v4066_v19, %v4910_v47 }
0x1652   :  { %v2304_v28 = vadd.f32 1.0, %v4068_v25 }
0x1653   :  { %2313 = vrot.lane.b32.xlu0 %v2311_v20, %s4322_s10 }
0x1654   :  { %4069 = vrcp.f32 %v2304_v28 }
0x165e   :  { %v4070_v32 = vpop.eup %4069 }
0x16c5   :  { %v2314_v30 = vpop.permute.xlu0 %2313 }
0x16c6   :  { %v4955_v31 = vadd.f32 %v2314_v30, %v2310_v29 }
0x16c8   :  { %4071 = vtanh.f32 %v4955_v31 }
0x16d2   :  { %v4072_v33 = vpop.eup %4071 }
0x16d3   :  { %v2318_v34 = vmul.f32 %v4072_v33, %v4070_v32 }
0x16d5   :  { %2320 = vrot.lane.b32.xlu1 %v2318_v34, %s4322_s10 }
0x1747   :  { %v2321_v35 = vpop.permute.xlu1 %2320 }
0x1748   :  { %3544 = vmatmul.mubr.msk.f32.vlgmr.msra.gmra.mrb[22].mxu1 %vm608_vm3, %v2321_v35 }
0x1749   :  { %3874 = vmatpush1.bf16.msra.mxu1 %v4579_v46  ;;  %2535 = vmatprep.mubr.f32.mxu1 %v4321_v1 }
0x174a   :  { %3876 = vmatprep.subr.bf16.mxu1 %v4574_v40 }
0x181b   :  { %v2390_v36 = vpop.f32.mrb[22].mxu1 }
0x181c   :  { %v2391_v37 = vadd.f32 %v4731_v16, %v2390_v36  ;;  %v3545_v39 = vpop.f32.mrb[23].mxu1 }
0x181e   :  { %v2394_v41 = vmax.f32 %v2391_v37, 0.0 }
0x1820   :  { %3555 = vmatmul.mubr.msk.f32.vlgmr.msra.gmra.mrb[20].mxu0 %vm162_vm1, %v2394_v41 }
0x1821   :  { %3893 = vmatpush3.bf16.msra.mxu0 %v4673_v45  ;;  %3573 = vmatprep.mubr.msk.f32.mxu0 %vm4320_vm0, %v4321_v1 }
0x1822   :  { %3894 = vmatprep.subr.bf16.mxu0 %v4319_v0 }
0x1825   :  { %3896 = vmatpush3.bf16.msra.mxu0 %v4679_v48 }
0x1826   :  { %3897 = vmatprep.subr.bf16.mxu0 %v4319_v0 }
0x1829   :  { %3899 = vmatpush3.bf16.msra.mxu0 %v4689_v51 }
0x182a   :  { %3900 = vmatprep.subr.bf16.mxu0 %v4319_v0 }
0x182d   :  { %3902 = vmatpush3.bf16.msra.mxu0 %v4699_v54 }
0x182e   :  { %3910 = vmatprep.subr.bf16.mxu0 %v4577_v44 }
0x18f3   :  { %v2464_v42 = vpop.f32.mrb[20].mxu0 }
0x18f4   :  { %v4976_v43 = vadd.f32 %v4748_v21, %v2464_v42  ;;  %v3556_v47 = vpop.f32.mrb[21].mxu0 }
0x18f6   :  { %3205 = vmatmul.mubr.msk.f32.vlgmr.msra.gmra.mrb[24].mxu1 %vm531_vm2, %v4976_v43 }
0x18f7   :  { %3878 = vmatpush1.bf16.msra.mxu1 %v4596_v55  ;;  %2608 = vmatprep.mubr.f32.mxu1 %v4321_v1 }
0x18f8   :  { %3880 = vmatprep.subr.bf16.mxu1 %v4598_v57 }
0x18fb   :  { %3882 = vmatpush1.bf16.msra.mxu1 %v4614_v62 }
0x18fc   :  { %3884 = vmatprep.subr.bf16.mxu1 %v4618_v63 }
0x18ff   :  { %3886 = vmatpush1.bf16.msra.mxu1 %v4627_v6 }
0x1900   :  { %3888 = vmatprep.subr.bf16.mxu1 %v4637_v9 }
0x1903   :  { %3890 = vmatpush1.bf16.msra.mxu1 %v4645_v12 }
0x1904   :  { %3903 = vmatprep.subr.bf16.mxu1 %v4319_v0 }
0x1906   :  { %3206 = vmatmul.mubr.msk.f32.vlgmr.msra.gmra.mrb[24].mxu1 %vm608_vm3, %v2321_v35 }
0x1907   :  { %3905 = vmatpush3.bf16.msra.mxu1 %v4714_v10  ;;  %3584 = vmatprep.mubr.msk.f32.mxu1 %vm4320_vm0, %v4321_v1 }
0x1908   :  { %3906 = vmatprep.subr.bf16.mxu1 %v4319_v0 }
0x190b   :  { %3908 = vmatpush3.bf16.msra.mxu1 %v4727_v15 }
0x190c   :  { %3929 = vmatprep.subr.bf16.mxu1 %v4319_v0 }
0x19d9   :  { %v2610_v44 = vpop.f32.mrb[24].mxu1 }
0x19da   :  { %v3961_v49 = vadd.f32 %v2610_v44, %v4657_v26  ;;  %v2612_v50 = vpop.f32.mrb[25].mxu1 }
0x19db   :  { %v3962_v53 = vadd.f32 %v2612_v50, %v4659_v27 }
0x19dc   :  { %v3207_v52 = vmul.f32 -1.442695, %v3961_v49 }
0x19dd   :  { %v3208_v4 = vmul.f32 -1.442695, %v3962_v53 }
0x19de   :  { %4073 = vpow2.f32 %v3207_v52 }
0x19df   :  { %4075 = vtanh.f32 %v3962_v53 }
0x19e8   :  { %v4074_v56 = vpop.eup %4073 }
0x19e9   :  { %v2623_v58 = vadd.f32 1.0, %v4074_v56  ;;  %v4076_v59 = vpop.eup %4075 }
0x19eb   :  { %4077 = vrcp.f32 %v2623_v58 }
0x19ec   :  { %4079 = vpow2.f32 %v3208_v4 }
0x19f5   :  { %v4078_v60 = vpop.eup %4077 }
0x19f6   :  { %v2631_v2 = vmul.f32 %v4078_v60, %v4076_v59  ;;  %v4080_v5 = vpop.eup %4079  ;;  %v2630_v8 = vmul.f32 %v4078_v60, %v4955_v31 }
0x19f7   :  { %v2624_v7 = vadd.f32 1.0, %v4080_v5 }
0x19f8   :  { %2633 = vrot.lane.b32.xlu0 %v2631_v2, %s4322_s10 }
0x19f9   :  { %4081 = vrcp.f32 %v2624_v7 }
0x1a03   :  { %v4082_v14 = vpop.eup %4081 }
0x1a6a   :  { %v2634_v11 = vpop.permute.xlu0 %2633 }
0x1a6b   :  { %v5000_v13 = vadd.f32 %v2634_v11, %v2630_v8 }
0x1a6d   :  { %4083 = vtanh.f32 %v5000_v13 }
0x1a77   :  { %v4084_v17 = vpop.eup %4083 }
0x1a78   :  { %v2638_v18 = vmul.f32 %v4084_v17, %v4082_v14 }
0x1a7a   :  { %2640 = vrot.lane.b32.xlu1 %v2638_v18, %s4322_s10 }
0x1aec   :  { %v2641_v19 = vpop.permute.xlu1 %2640 }
0x1aed   :  { %3574 = vmatmul.mubr.msk.f32.vlgmr.msra.gmra.mrb[22].mxu0 %vm608_vm3, %v2641_v19 }
0x1aee   :  { %3912 = vmatpush1.bf16.msra.mxu0 %v4579_v46  ;;  %2855 = vmatprep.mubr.f32.mxu0 %v4321_v1 }
0x1aef   :  { %3914 = vmatprep.subr.bf16.mxu0 %v4574_v40 }
0x1bc0   :  { %v2710_v20 = vpop.f32.mrb[22].mxu0 }
0x1bc1   :  { %v2711_v24 = vadd.f32 %v4731_v16, %v2710_v20  ;;  %v3575_v25 = vpop.f32.mrb[23].mxu0 }
0x1bc3   :  { %v2714_v28 = vmax.f32 %v2711_v24, 0.0 }
0x1bc5   :  { %3585 = vmatmul.mubr.msk.f32.vlgmr.msra.gmra.mrb[26].mxu1 %vm162_vm1, %v2714_v28 }
0x1bc6   :  { %3931 = vmatpush3.bf16.msra.mxu1 %v4673_v45  ;;  %3603 = vmatprep.mubr.msk.f32.mxu1 %vm4320_vm0, %v4321_v1 }
0x1bc7   :  { %3932 = vmatprep.subr.bf16.mxu1 %v4319_v0 }
0x1bca   :  { %3934 = vmatpush3.bf16.msra.mxu1 %v4679_v48 }
0x1bcb   :  { %3935 = vmatprep.subr.bf16.mxu1 %v4319_v0 }
0x1bce   :  { %3937 = vmatpush3.bf16.msra.mxu1 %v4689_v51 }
0x1bcf   :  { %3938 = vmatprep.subr.bf16.mxu1 %v4319_v0 }
0x1bd2   :  { %3940 = vmatpush3.bf16.msra.mxu1 %v4699_v54 }
0x1c98   :  { %v2784_v40 = vpop.f32.mrb[26].mxu1 }
0x1c99   :  { %v2785_v46 = vadd.f32 %v4748_v21, %v2784_v40  ;;  %v3586_v29 = vpop.f32.mrb[27].mxu1 }
0x1c9b   :  { %3211 = vmatmul.mubr.msk.f32.vlgmr.msra.gmra.mrb[24].mxu0 %vm531_vm2, %v2785_v46 }
0x1c9c   :  { %3916 = vmatpush1.bf16.msra.mxu0 %v4596_v55  ;;  %2928 = vmatprep.mubr.f32.mxu0 %v4321_v1 }
0x1c9d   :  { %3918 = vmatprep.subr.bf16.mxu0 %v4598_v57 }
0x1ca0   :  { %3920 = vmatpush1.bf16.msra.mxu0 %v4614_v62 }
0x1ca1   :  { %3922 = vmatprep.subr.bf16.mxu0 %v4618_v63 }
0x1ca4   :  { %3924 = vmatpush1.bf16.msra.mxu0 %v4627_v6 }
0x1ca5   :  { %3926 = vmatprep.subr.bf16.mxu0 %v4637_v9 }
0x1ca8   :  { %3928 = vmatpush1.bf16.msra.mxu0 %v4645_v12 }
0x1ca9   :  { %3941 = vmatprep.subr.bf16.mxu0 %v4319_v0 }
0x1cab   :  { %3212 = vmatmul.mubr.msk.f32.vlgmr.msra.gmra.mrb[24].mxu0 %vm608_vm3, %v2641_v19 }
0x1cac   :  { %3943 = vmatpush3.bf16.msra.mxu0 %v4714_v10  ;;  %3614 = vmatprep.mubr.msk.f32.mxu0 %vm4320_vm0, %v4321_v1 }
0x1cad   :  { %3944 = vmatprep.subr.bf16.mxu0 %v4319_v0 }
0x1cb0   :  { %3946 = vmatpush3.bf16.msra.mxu0 %v4727_v15 }
0x1d7e   :  { %v2930_v55 = vpop.f32.mrb[24].mxu0 }
0x1d7f   :  { %v3963_v57 = vadd.f32 %v2930_v55, %v4657_v26  ;;  %v2932_v62 = vpop.f32.mrb[25].mxu0 }
0x1d80   :  { %v3964_v6 = vadd.f32 %v2932_v62, %v4659_v27 }
0x1d81   :  { %v3213_v63 = vmul.f32 -1.442695, %v3963_v57 }
0x1d82   :  { %v3214_v0 = vmul.f32 -1.442695, %v3964_v6 }
0x1d83   :  { %4085 = vpow2.f32 %v3213_v63 }
0x1d84   :  { %4087 = vtanh.f32 %v3964_v6 }
0x1d8d   :  { %v4086_v9 = vpop.eup %4085 }
0x1d8e   :  { %v2943_v12 = vadd.f32 1.0, %v4086_v9  ;;  %v4088_v45 = vpop.eup %4087 }
0x1d90   :  { %4089 = vrcp.f32 %v2943_v12 }
0x1d91   :  { %4091 = vpow2.f32 %v3214_v0 }
0x1d9a   :  { %v4090_v48 = vpop.eup %4089 }
0x1d9b   :  { %v2951_v51 = vmul.f32 %v4090_v48, %v4088_v45  ;;  %v4092_v1 = vpop.eup %4091  ;;  %v2950_v27 = vmul.f32 %v4090_v48, %v5000_v13 }
0x1d9c   :  { %v2944_v26 = vadd.f32 1.0, %v4092_v1 }
0x1d9d   :  { %2953 = vrot.lane.b32.xlu0 %v2951_v51, %s4322_s10 }
0x1d9e   :  { %4093 = vrcp.f32 %v2944_v26 }
0x1da1   :  { %3108 = vrot.lane.b32.xlu0 %v4796_v61, %s4313_s18  ;;  %s4325_s18 = smov 32  }
0x1da5   :  { %3114 = vrot.lane.b32.xlu0 %v4886_v22, %s4323_s14 }
0x1da8   :  { %v4094_v15 = vpop.eup %4093 }
0x1da9   :  { %3120 = vrot.lane.b32.xlu0 %v4976_v43, %s4324_s5 }
0x1e0f   :  { %v2954_v54 = vpop.permute.xlu0 %2953 }
0x1e10   :  { %v2956_v10 = vadd.f32 %v2954_v54, %v2950_v27 }
0x1e12   :  { %4095 = vtanh.f32 %v2956_v10 }
0x1e1c   :  { %v4096_v30 = vpop.eup %4095 }
0x1e1d   :  { %v2958_v31 = vmul.f32 %v4096_v30, %v4094_v15 }
0x1e1f   :  { %2960 = vrot.lane.b32.xlu1 %v2958_v31, %s4322_s10 }
0x1e23   :  { %3111 = vrot.lane.b32.xlu1 %v4841_v38, %s4325_s18  ;;  %v3109_v38 = vpop.permute.xlu0 %3108 }
0x1e24   :  { %v3130_v41 = vsel %vm531_vm2, %v4751_v23, %v3109_v38 }
0x1e27   :  { %3117 = vrot.lane.b32.xlu1 %v4931_v3, %s4322_s10  ;;  %v3115_v39 = vpop.permute.xlu0 %3114  ;;  %s4328_s10 = smov [#allocation16]  }
0x1e28   :  { %s3148_s21 = sshll.u32 %s4328_s10, 4  ;;  %s3149_s21 = int_to_ptr.vmem [resolvable:$true] %s3148_s21 }
0x1e29   :  { %s4273_s6 = scalar_lea.vmem %s3149_s21, 32  ;;  %p4278_p9 = scmp.lt.s32.totalorder %s3149_s21, %s3149_s21 }
0x1e2a   :  { %p4274_p8 = scmp.ne.s32.totalorder %s3149_s21, %s4273_s6  ;;  %p4279_p10 = scmp.lt.s32.totalorder %s4273_s6, %s4273_s6 }
0x1e2b   :  { %3123 = vrot.lane.b32.xlu1 %v2785_v46, %s4326_s24  ;;  %v3121_v47 = vpop.permute.xlu0 %3120 }
0x1e2c   :  { %p4280_p11 = por %p4279_p10, %p4278_p9 }
0x1e2e   :  { %p4281_p12 = pnand %p4280_p11, %p4274_p8 }
0x1e91   :  { %v2961_v61 = vpop.permute.xlu1 %2960 }
0x1e92   :  { %3604 = vmatmul.mubr.msk.f32.vlgmr.msra.gmra.mrb[28].mxu1 %vm608_vm3, %v2961_v61 }
0x1e95   :  { %v3112_v3 = vpop.permute.xlu1 %3111 }
0x1e96   :  { %v3131_v43 = vsel %vm162_vm1, %v3130_v41, %v3112_v3 }
0x1e99   :  { %v3118_v42 = vpop.permute.xlu1 %3117 }
0x1f65   :  { %v3030_v22 = vpop.f32.mrb[28].mxu1 }
0x1f66   :  { %v3031_v32 = vadd.f32 %v4731_v16, %v3030_v22  ;;  %v3605_v33 = vpop.f32.mrb[29].mxu1  ;;  %v3133_v16 = vsel %vm3132_vm4, %v3131_v43, %v3115_v39 }
0x1f67   :  { %v3134_v44 = vsel %vm608_vm3, %v3133_v16, %v3118_v42 }
0x1f68   :  { %v3034_v34 = vmax.f32 %v3031_v32, 0.0  ;;  %v3136_v49 = vsel %vm3135_vm5, %v3134_v44, %v3121_v47 }
0x1f6a   :  { %3615 = vmatmul.mubr.msk.f32.vlgmr.msra.gmra.mrb[26].mxu0 %vm162_vm1, %v3034_v34 }
0x203d   :  { %v3104_v35 = vpop.f32.mrb[26].mxu0 }
0x203e   :  { %v3105_v36 = vadd.f32 %v4748_v21, %v3104_v35  ;;  %v3616_v37 = vpop.f32.mrb[27].mxu0  ;;  %v3124_v21 = vpop.permute.xlu1 %3123 }
0x203f   :  { %v3138_v50 = vsel %vm3137_vm6, %v3136_v49, %v3124_v21 }
0x2040   :  { %3127 = vrot.lane.b32.xlu0 %v3105_v36, %s4327_s26 }
0x20b2   :  { %v3128_v52 = vpop.permute.xlu0 %3127 }
0x20b3   :  { %v3140_v53 = vsel %vm3139_vm7, %v3138_v50, %v3128_v52 }
0x20b4   :  { %3141 = vst [vmem:[#allocation16] sm:$0x3] %v3140_v53 }
0x20b5   :  { %4284 = shalt.err (!%p4281_p12)
}
0x20b6   :  { %s5086_s27 = sld [smem:[#allocation23_spill]] }
0x20bc   :  { %s4285_s1 = scalar_lea.hbm %s5086_s27, 32 }
0x20bd   :  { %p4286_p13 = scmp.ne.s32.totalorder %s5086_s27, %s4285_s1  ;;  %p4289_p0 = scmp.lt.u32.totalorder %s4285_s1, %s5086_s27 }
0x20bf   :  { %p4291_p1 = pnand %p4289_p0, %p4286_p13 }
0x20c1   :  { %4294 = shalt.err (!%p4291_p1)
}
0x20c2   :  { %3151 = dma.vmem_to_hbm [thread:$0]  %s3149_s21, 32, %s5086_s27, [#allocation4]  }
0x20c3   :  { %4305 = dma.done.wait [#allocation4], 32  }
0x20c4   :  { %4306 = vsyncadd [#allocation4], 4294967264 }
0x20c5   :  { %3155 = vsyncpa [#allocation3], 1 }
0x20c6   :  { %3156 = vsyncpa [#allocation6], 1 }
0x20c7   :  { %3157 = vsyncpa [#allocation9], 1 }
0x20c8   :  { %3158 = vsyncpa [#allocation12], 1 }
0x20c9   :  { %3159 = vsyncpa [#allocation15], 1 }
0x20ca   :  { %3160 = vsyncpa [#allocation4], 1 }

</bundles_post_ra>
